<compile_context>
chip_gen: v7x
topology: tpu7x:2x2x1
jax: 0.10.0
libtpu: 0.0.40
codegen_flags: <defaults>
</compile_context>

<pallas_src>
import jax
import jax.numpy as jnp
import numpy as np
from jax.experimental import pallas as pl
from jax.experimental.pallas import tpu as pltpu

# ---------------- configuration (matches module __init__ args) ----------------
HEADS = 4          # Heads
DIM_IN = 32        # Dim_input
N_OUT = 8          # N_output
DIM_OUT = 32       # Dim_output
HK = HEADS * N_OUT
H1 = HK // 8 if HK // 8 > 0 else HEADS      # hiden_channels_1
H2 = HK // 2 if HK // 2 > 0 else HEADS      # hiden_channels_2
EPS_COS = 1e-6     # CosineSimilarity eps
EPS_NORM = 1e-10   # normalizer eps

GB_MAX = 32        # max graphs processed per grid step
SLAB_W = 8 + DIM_OUT   # packed small-parameter slab width


# ---------------- fused kernel: centroid MLP + adaptive pooling ----------------
def fused_pool_kernel(x_ref, adj_ref, w2_ref, w3_ref, linw_ref, slab_ref,
                      newx_ref, newadj_ref):
    # ---- unpack the consolidated small-parameter slab (once per grid step) ----
    slab = slab_ref[...]
    w1c = slab[0:H1, 0:1]              # [H1,1]  input2centroids_1 weight column
    b1c = slab[0:H1, 1:2]              # [H1,1]
    b2c = slab[0:H2, 2:3]              # [H2,1]
    b3c = slab[:, 3:4]                 # [HK,1]
    wrow = slab[:, 4:5]                # [HK,1]  conv weight repeated per (head,k) row
    convb = slab[0:1, 5:6]             # [1,1]   conv bias
    linb = slab[0:1, 8:8 + DIM_OUT]    # [1,DIM_OUT]
    w2 = w2_ref[...]                   # [H2,H1]
    w3 = w3_ref[...]                   # [HK,H2]
    linw = linw_ref[...]               # [DIM_OUT,DIM_IN] (torch layout, contract dim 1)

    gb = x_ref.shape[0]
    n = x_ref.shape[1]

    # Static loop over the GB graphs in this block: each iteration is an
    # independent op chain the scheduler can interleave across the MXU/VPU/XLU.
    for g in range(gb):
        x = x_ref[g]                                             # [N, D] f32

        # --- centroid MLP (input2centroids_1/2/3), transposed form -> [HK, D] ---
        mean = jnp.mean(x, axis=0, keepdims=True)                # [1, D]
        # layer 1 is a rank-1 outer product: broadcast-multiply on the VPU
        y1 = jnp.maximum(w1c * mean + b1c, 0.0)                  # [H1, D]
        y2 = jnp.maximum(jnp.dot(w2, y1,
                                 preferred_element_type=jnp.float32) + b2c, 0.0)  # [H2, D]
        c = jnp.maximum(jnp.dot(w3, y2,
                                preferred_element_type=jnp.float32) + b3c, 0.0)   # [HK, D]
        # row h*N_OUT + k of `c` is centroid (head h, output node k) — same as
        # the torch permute(0,2,1).view(B, Heads, N_output, Dim_input).

        # --- cosine similarity along the feature dim (torch dim=4), pre-normalized ---
        # (each norm clamped separately; differs from torch only when a norm < eps)
        inv_xn = jax.lax.rsqrt(jnp.maximum(jnp.sum(x * x, axis=1, keepdims=True),
                                           EPS_COS * EPS_COS))   # [N, 1]   (EUP rsqrt)
        inv_cn = jax.lax.rsqrt(jnp.maximum(jnp.sum(c * c, axis=1, keepdims=True),
                                           EPS_COS * EPS_COS))   # [HK, 1]
        ch = jax.lax.dot_general(c * inv_cn, x * inv_xn,
                                 (((1,), (1,)), ((), ())),
                                 preferred_element_type=jnp.float32)   # [HK, N]

        # --- per-head normalization over K + 1x1 conv over heads (vectorized) ---
        ch3 = ch.reshape(HEADS, N_OUT, n)                        # tile-aligned reshape
        normz = jnp.sum(ch3, axis=1, keepdims=True)              # [HEADS, 1, N]
        # exact reciprocal: normz is a sum of signed cosines and can be ~0, so the
        # approx EUP reciprocal's error would be amplified into the outputs.
        inv_norm = pl.reciprocal(normz + EPS_NORM, approx=False)
        chw3 = (ch * wrow).reshape(HEADS, N_OUT, n)              # conv_w applied per row
        C = jnp.sum(chw3 * inv_norm, axis=0) + convb             # [N_OUT, N]

        # --- new_node_set = (C @ node_set) @ W^T + b  (dim_feat_transformation) ---
        pooled = jnp.dot(C, x, preferred_element_type=jnp.float32)        # [N_OUT, D]
        new_x = jax.lax.dot_general(pooled, linw, (((1,), (1,)), ((), ())),
                                    preferred_element_type=jnp.float32) + linb

        # --- new_adj = relu((C @ adj) @ C^T); adj is bf16 0/1 -> upcast is exact ---
        adj = adj_ref[g].astype(jnp.float32)                              # [N, N]
        q = jnp.dot(C, adj, preferred_element_type=jnp.float32)           # [N_OUT, N]
        new_adj = jnp.maximum(
            jax.lax.dot_general(q, C, (((1,), (1,)), ((), ())),
                                preferred_element_type=jnp.float32), 0.0)  # [N_OUT, N_OUT]

        # per-graph results land at sublane offset g*N_OUT inside the per-step block
        newx_ref[g * N_OUT:(g + 1) * N_OUT, :] = new_x
        newadj_ref[g * N_OUT:(g + 1) * N_OUT, :] = new_adj


# ---------------- host-side helpers ----------------
def _choose_blocking(num_graphs):
    """Pick (graphs-per-step, steps): steps >= 2 and even so v7x's two
    TensorCores both get work (harmless on v5e/v6e)."""
    steps = max(2, pl.cdiv(num_graphs, GB_MAX))
    if steps % 2:
        steps += 1
    gb = pl.cdiv(num_graphs, steps)
    steps = max(2, pl.cdiv(num_graphs, gb))
    if steps % 2:
        steps += 1
    return gb, steps


def _pack_small_params(p):
    """Pack w1/b1/b2/b3/conv_w/conv_b/lin_b into one [HK, SLAB_W] VMEM slab."""
    slab = jnp.zeros((HK, SLAB_W), jnp.float32)
    slab = slab.at[:H1, 0].set(p["w1"][:, 0])
    slab = slab.at[:H1, 1].set(p["b1"])
    slab = slab.at[:H2, 2].set(p["b2"])
    slab = slab.at[:, 3].set(p["b3"])
    slab = slab.at[:, 4].set(jnp.repeat(p["conv_w"].reshape(HEADS), N_OUT))
    slab = slab.at[0, 5].set(p["conv_b"][0])
    slab = slab.at[0, 8:8 + DIM_OUT].set(p["lin_b"])
    return slab


# ---------------- wrapper: one pallas_call, GB graphs per grid step ----------------
def adaptive_pooling_batched(xs, adjs, p):
    """xs [G, N, DIM_IN] f32, adjs [G, N, N] {0,1} ->
       (new_x [G, N_OUT, DIM_OUT], new_adj [G, N_OUT, N_OUT])."""
    G, N, D = xs.shape
    gb, steps = _choose_blocking(G)
    gp = gb * steps

    adjs_b = adjs.astype(jnp.bfloat16)        # exact for 0/1; halves adj HBM traffic
    if gp != G:                               # zero-pad to a whole number of blocks
        pad = gp - G
        xs = jnp.concatenate([xs, jnp.zeros((pad, N, D), xs.dtype)], axis=0)
        adjs_b = jnp.concatenate([adjs_b, jnp.zeros((pad, N, N), adjs_b.dtype)], axis=0)

    slab = _pack_small_params(p)
    const = lambda shape: pl.BlockSpec(shape, lambda s, _shape=shape: (0,) * len(_shape))

    out_x, out_adj = pl.pallas_call(
        fused_pool_kernel,
        out_shape=(jax.ShapeDtypeStruct((steps, gb * N_OUT, DIM_OUT), jnp.float32),
                   jax.ShapeDtypeStruct((steps, gb * N_OUT, N_OUT), jnp.float32)),
        grid=(steps,),
        in_specs=[
            pl.BlockSpec((gb, N, D), lambda s: (s, 0, 0)),   # node features, GB graphs
            pl.BlockSpec((gb, N, N), lambda s: (s, 0, 0)),   # adjacency (bf16), GB graphs
            const((H2, H1)),          # w2
            const((HK, H2)),          # w3
            const((DIM_OUT, DIM_IN)),  # lin_w
            const((HK, SLAB_W)),      # packed small params
        ],
        out_specs=(pl.BlockSpec((None, gb * N_OUT, DIM_OUT), lambda s: (s, 0, 0)),
                   pl.BlockSpec((None, gb * N_OUT, N_OUT), lambda s: (s, 0, 0))),
        compiler_params=pltpu.CompilerParams(
            dimension_semantics=("parallel",)),   # shards grid steps across TCs on v7x
    )(xs, adjs_b, p["w2"], p["w3"], p["lin_w"], slab)

    new_x = out_x.reshape(steps * gb, N_OUT, DIM_OUT)[:G]
    new_adj = out_adj.reshape(steps * gb, N_OUT, N_OUT)[:G]
    return new_x, new_adj


def pooling_layers_forward(xs, adjs, p):
    """Mirrors Pooling_Layers.forward: Adaptive_Pooling on every graph, then the
    pooled node features concatenated ('new_ins')."""
    # TODO(synk): PyGSingleGraphData / dense_to_sparse / encode_node_features /
    # batch_data.update_data are host-side graph-data plumbing with no Pallas
    # equivalent; pooled features are concatenated directly instead.
    new_x, new_adj = adaptive_pooling_batched(xs, adjs, p)
    new_ins = new_x.reshape(-1, DIM_OUT)
    return new_ins, new_x, new_adj


# ---------------- pure-JAX reference (mirrors the torch math) ----------------
def adaptive_pooling_ref(node_set, adj, p):
    x = node_set[None]                                        # [1, N, D]
    bc = jnp.mean(x, axis=1, keepdims=True)                   # [1, 1, D]
    bc = jnp.transpose(bc, (0, 2, 1))                         # [1, D, 1]
    bc = jax.nn.relu(bc @ p["w1"][:, :1].T + p["b1"])         # [1, D, H1]
    bc = jax.nn.relu(bc @ p["w2"].T + p["b2"])                # [1, D, H2]
    bc = jax.nn.relu(bc @ p["w3"].T + p["b3"])                # [1, D, HK]
    bc = jnp.transpose(bc, (0, 2, 1)).reshape(1, HEADS, N_OUT, DIM_IN)
    n = x.shape[1]
    ns = jnp.broadcast_to(x[:, None, None], (1, HEADS, N_OUT, n, DIM_IN))
    cs = jnp.broadcast_to(bc[:, :, :, None], ns.shape)
    dot = jnp.sum(ns * cs, axis=4)
    sx = jnp.sum(ns * ns, axis=4)
    sc = jnp.sum(cs * cs, axis=4)
    ch = dot / jnp.sqrt(jnp.maximum(sx * sc, EPS_COS * EPS_COS))
    normz = jnp.sum(ch, axis=2, keepdims=True)
    ch = ch / (normz + EPS_NORM)
    C = jnp.sum(p["conv_w"].reshape(1, HEADS, 1, 1) * ch, axis=1) + p["conv_b"][0]
    new_x = C @ x
    new_x = new_x @ p["lin_w"].T + p["lin_b"]
    q = C @ adj[None]
    new_adj = jax.nn.relu(q @ jnp.transpose(C, (0, 2, 1)))
    return new_x[0], new_adj[0]


# ---------------- deterministic parameter / input construction ----------------
def make_params(key):
    ks = jax.random.split(key, 10)
    u = lambda k, s: (jax.random.uniform(k, s, jnp.float32) - 0.5) * 0.4
    return dict(
        w1=u(ks[0], (H1, 1)),        b1=u(ks[1], (H1,)),
        w2=u(ks[2], (H2, H1)),       b2=u(ks[3], (H2,)),
        w3=u(ks[4], (HK, H2)),       b3=u(ks[5], (HK,)),
        conv_w=u(ks[6], (1, HEADS, 1, 1)), conv_b=u(ks[7], (1,)),
        lin_w=u(ks[8], (DIM_OUT, DIM_IN)), lin_b=u(ks[9], (DIM_OUT,)),
    )


def make_graph(key, n_nodes):
    kx, ka = jax.random.split(key)
    x = jax.random.normal(kx, (n_nodes, DIM_IN), jnp.float32)
    a = (jax.random.uniform(ka, (n_nodes, n_nodes)) < 0.3).astype(jnp.float32)
    adj = jnp.maximum(a, a.T) * (1.0 - jnp.eye(n_nodes, dtype=jnp.float32))
    return x, adj


if __name__ == "__main__":
    key = jax.random.PRNGKey(0)
    kp, kg = jax.random.split(key)
    params = make_params(kp)

    G, N_NODES = 8, 16
    gkeys = jax.random.split(kg, G)
    graphs = [make_graph(k, N_NODES) for k in gkeys]
    xs = jnp.stack([g[0] for g in graphs], axis=0)      # [G, N, DIM_IN]
    adjs = jnp.stack([g[1] for g in graphs], axis=0)    # [G, N, N]

    fwd = jax.jit(pooling_layers_forward)
    new_ins, new_x, new_adj = fwd(xs, adjs, params)
    new_ins = jax.block_until_ready(new_ins)

    # verify against a pure-JAX reference of the torch math
    # (tolerance allows for MXU-vs-XLA accumulation-order and reciprocal ulp
    #  differences that get amplified when a head's cosine normalizer is small)
    for gi in range(G):
        rx, ra = adaptive_pooling_ref(xs[gi], adjs[gi], params)
        np.testing.assert_allclose(np.asarray(new_x[gi]), np.asarray(rx),
                                   rtol=1e-3, atol=1e-4)
        np.testing.assert_allclose(np.asarray(new_adj[gi]), np.asarray(ra),
                                   rtol=1e-3, atol=1e-4)

    print("KERNEL_OK")
</pallas_src>

<mosaic_0001>
module attributes {stable_mosaic.version = 11 : i64} {
  func.func @fused_pool_kernel(%arg0: i32, %arg1: memref<4x16x32xf32, #tpu.memory_space<vmem>>, %arg2: memref<4x16x16xbf16, #tpu.memory_space<vmem>>, %arg3: memref<16x4xf32, #tpu.memory_space<vmem>>, %arg4: memref<32x16xf32, #tpu.memory_space<vmem>>, %arg5: memref<32x32xf32, #tpu.memory_space<vmem>>, %arg6: memref<32x40xf32, #tpu.memory_space<vmem>>, %arg7: memref<1x32x32xf32, #tpu.memory_space<vmem>>, %arg8: memref<1x32x8xf32, #tpu.memory_space<vmem>>) attributes {dimension_semantics = [#tpu.dimension_semantics<parallel>], iteration_bounds = array<i64: 2>, scalar_prefetch = 0 : i64, scratch_operands = 0 : i64, tpu.core_type = #tpu.core_type<tc>, window_params = [{transform_indices = @transform_0, window_bounds = array<i64: 4, 16, 32>}, {transform_indices = @transform_1, window_bounds = array<i64: 4, 16, 16>}, {pipeline_mode = #tpu.pipeline_mode<synchronous>, transform_indices = @transform_2, window_bounds = array<i64: 16, 4>}, {pipeline_mode = #tpu.pipeline_mode<synchronous>, transform_indices = @transform_3, window_bounds = array<i64: 32, 16>}, {pipeline_mode = #tpu.pipeline_mode<synchronous>, transform_indices = @transform_4, window_bounds = array<i64: 32, 32>}, {pipeline_mode = #tpu.pipeline_mode<synchronous>, transform_indices = @transform_5, window_bounds = array<i64: 32, 40>}, {transform_indices = @transform_6, window_bounds = array<i64: 1, 32, 32>}, {transform_indices = @transform_7, window_bounds = array<i64: 1, 32, 8>}]} {
    %c0 = arith.constant 0 : index
    %c0_0 = arith.constant 0 : index
    %0 = vector.load %arg6[%c0, %c0_0] : memref<32x40xf32, #tpu.memory_space<vmem>>, vector<32x40xf32>
    %1 = vector.extract_strided_slice %0 {offsets = [0, 0], sizes = [4, 1], strides = [1, 1]} : vector<32x40xf32> to vector<4x1xf32>
    %2 = vector.extract_strided_slice %0 {offsets = [0, 1], sizes = [4, 1], strides = [1, 1]} : vector<32x40xf32> to vector<4x1xf32>
    %3 = vector.extract_strided_slice %0 {offsets = [0, 2], sizes = [16, 1], strides = [1, 1]} : vector<32x40xf32> to vector<16x1xf32>
    %4 = vector.extract_strided_slice %0 {offsets = [0, 3], sizes = [32, 1], strides = [1, 1]} : vector<32x40xf32> to vector<32x1xf32>
    %5 = vector.extract_strided_slice %0 {offsets = [0, 4], sizes = [32, 1], strides = [1, 1]} : vector<32x40xf32> to vector<32x1xf32>
    %6 = vector.extract_strided_slice %0 {offsets = [0, 5], sizes = [1, 1], strides = [1, 1]} : vector<32x40xf32> to vector<1x1xf32>
    %7 = vector.extract_strided_slice %0 {offsets = [0, 8], sizes = [1, 32], strides = [1, 1]} : vector<32x40xf32> to vector<1x32xf32>
    %c0_1 = arith.constant 0 : index
    %c0_2 = arith.constant 0 : index
    %8 = vector.load %arg3[%c0_1, %c0_2] : memref<16x4xf32, #tpu.memory_space<vmem>>, vector<16x4xf32>
    %c0_3 = arith.constant 0 : index
    %c0_4 = arith.constant 0 : index
    %9 = vector.load %arg4[%c0_3, %c0_4] : memref<32x16xf32, #tpu.memory_space<vmem>>, vector<32x16xf32>
    %c0_5 = arith.constant 0 : index
    %c0_6 = arith.constant 0 : index
    %10 = vector.load %arg5[%c0_5, %c0_6] : memref<32x32xf32, #tpu.memory_space<vmem>>, vector<32x32xf32>
    %c0_7 = arith.constant 0 : index
    %c0_8 = arith.constant 0 : index
    %c0_9 = arith.constant 0 : index
    %11 = vector.load %arg1[%c0_7, %c0_8, %c0_9] : memref<4x16x32xf32, #tpu.memory_space<vmem>>, vector<1x16x32xf32>
    %12 = vector.shape_cast %11 : vector<1x16x32xf32> to vector<16x32xf32>
    %cst = arith.constant dense<0.000000e+00> : vector<32xf32>
    %13 = vector.multi_reduction <add>, %12, %cst [0] : vector<16x32xf32> to vector<32xf32>
    %14 = vector.shape_cast %13 : vector<32xf32> to vector<1x32xf32>
    %cst_10 = arith.constant 1.600000e+01 : f32
    %15 = vector.broadcast %cst_10 : f32 to vector<1x32xf32>
    %16 = arith.divf %14, %15 : vector<1x32xf32>
    %17 = vector.broadcast %1 : vector<4x1xf32> to vector<4x32xf32>
    %18 = vector.broadcast %16 : vector<1x32xf32> to vector<4x32xf32>
    %19 = arith.mulf %17, %18 : vector<4x32xf32>
    %20 = vector.broadcast %2 : vector<4x1xf32> to vector<4x32xf32>
    %21 = arith.addf %19, %20 : vector<4x32xf32>
    %cst_11 = arith.constant 0.000000e+00 : f32
    %22 = vector.broadcast %cst_11 : f32 to vector<4x32xf32>
    %23 = arith.maximumf %21, %22 : vector<4x32xf32>
    %cst_12 = arith.constant dense<0.000000e+00> : vector<16x32xf32>
    %24 = tpu.matmul %8, %23, %cst_12 {dimension_numbers = #tpu.dot_dimension_numbers<[1], [0], [0], [1], [0, 0, 1, 1], [], []>} : vector<16x4xf32>, vector<4x32xf32>, vector<16x32xf32> -> vector<16x32xf32>
    %25 = vector.broadcast %3 : vector<16x1xf32> to vector<16x32xf32>
    %26 = arith.addf %24, %25 : vector<16x32xf32>
    %cst_13 = arith.constant 0.000000e+00 : f32
    %27 = vector.broadcast %cst_13 : f32 to vector<16x32xf32>
    %28 = arith.maximumf %26, %27 : vector<16x32xf32>
    %cst_14 = arith.constant dense<0.000000e+00> : vector<32x32xf32>
    %29 = tpu.matmul %9, %28, %cst_14 {dimension_numbers = #tpu.dot_dimension_numbers<[1], [0], [0], [1], [0, 0, 1, 1], [], []>} : vector<32x16xf32>, vector<16x32xf32>, vector<32x32xf32> -> vector<32x32xf32>
    %30 = vector.broadcast %4 : vector<32x1xf32> to vector<32x32xf32>
    %31 = arith.addf %29, %30 : vector<32x32xf32>
    %cst_15 = arith.constant 0.000000e+00 : f32
    %32 = vector.broadcast %cst_15 : f32 to vector<32x32xf32>
    %33 = arith.maximumf %31, %32 : vector<32x32xf32>
    %34 = arith.mulf %12, %12 : vector<16x32xf32>
    %cst_16 = arith.constant dense<0.000000e+00> : vector<16xf32>
    %35 = vector.multi_reduction <add>, %34, %cst_16 [1] : vector<16x32xf32> to vector<16xf32>
    %36 = vector.shape_cast %35 : vector<16xf32> to vector<16x1xf32>
    %cst_17 = arith.constant 9.99999996E-13 : f32
    %37 = vector.broadcast %cst_17 : f32 to vector<16x1xf32>
    %38 = arith.maximumf %36, %37 : vector<16x1xf32>
    %39 = math.rsqrt %38 : vector<16x1xf32>
    %40 = arith.mulf %33, %33 : vector<32x32xf32>
    %cst_18 = arith.constant dense<0.000000e+00> : vector<32xf32>
    %41 = vector.multi_reduction <add>, %40, %cst_18 [1] : vector<32x32xf32> to vector<32xf32>
    %42 = vector.shape_cast %41 : vector<32xf32> to vector<32x1xf32>
    %cst_19 = arith.constant 9.99999996E-13 : f32
    %43 = vector.broadcast %cst_19 : f32 to vector<32x1xf32>
    %44 = arith.maximumf %42, %43 : vector<32x1xf32>
    %45 = math.rsqrt %44 : vector<32x1xf32>
    %46 = vector.broadcast %45 : vector<32x1xf32> to vector<32x32xf32>
    %47 = arith.mulf %33, %46 : vector<32x32xf32>
    %48 = vector.broadcast %39 : vector<16x1xf32> to vector<16x32xf32>
    %49 = arith.mulf %12, %48 : vector<16x32xf32>
    %cst_20 = arith.constant dense<0.000000e+00> : vector<32x16xf32>
    %50 = tpu.matmul %47, %49, %cst_20 {dimension_numbers = #tpu.dot_dimension_numbers<[1], [1], [0], [0], [0, 0, 1, 0], [], []>} : vector<32x32xf32>, vector<16x32xf32>, vector<32x16xf32> -> vector<32x16xf32>
    %51 = vector.shape_cast %50 : vector<32x16xf32> to vector<4x8x16xf32>
    %cst_21 = arith.constant dense<0.000000e+00> : vector<4x16xf32>
    %52 = vector.multi_reduction <add>, %51, %cst_21 [1] : vector<4x8x16xf32> to vector<4x16xf32>
    %53 = vector.shape_cast %52 : vector<4x16xf32> to vector<4x1x16xf32>
    %cst_22 = arith.constant 1.000000e-10 : f32
    %54 = vector.broadcast %cst_22 : f32 to vector<4x1x16xf32>
    %55 = arith.addf %53, %54 : vector<4x1x16xf32>
    %56 = tpu.reciprocal %55 : vector<4x1x16xf32> -> vector<4x1x16xf32>
    %57 = vector.broadcast %5 : vector<32x1xf32> to vector<32x16xf32>
    %58 = arith.mulf %50, %57 : vector<32x16xf32>
    %59 = vector.shape_cast %58 : vector<32x16xf32> to vector<4x8x16xf32>
    %60 = vector.broadcast %56 : vector<4x1x16xf32> to vector<4x8x16xf32>
    %61 = arith.mulf %59, %60 : vector<4x8x16xf32>
    %cst_23 = arith.constant dense<0.000000e+00> : vector<8x16xf32>
    %62 = vector.multi_reduction <add>, %61, %cst_23 [0] : vector<4x8x16xf32> to vector<8x16xf32>
    %63 = vector.broadcast %6 : vector<1x1xf32> to vector<8x16xf32>
    %64 = arith.addf %62, %63 : vector<8x16xf32>
    %cst_24 = arith.constant dense<0.000000e+00> : vector<8x32xf32>
    %65 = tpu.matmul %64, %12, %cst_24 {dimension_numbers = #tpu.dot_dimension_numbers<[1], [0], [0], [1], [0, 0, 1, 1], [], []>} : vector<8x16xf32>, vector<16x32xf32>, vector<8x32xf32> -> vector<8x32xf32>
    %cst_25 = arith.constant dense<0.000000e+00> : vector<8x32xf32>
    %66 = tpu.matmul %65, %10, %cst_25 {dimension_numbers = #tpu.dot_dimension_numbers<[1], [1], [0], [0], [0, 0, 1, 0], [], []>} : vector<8x32xf32>, vector<32x32xf32>, vector<8x32xf32> -> vector<8x32xf32>
    %67 = vector.broadcast %7 : vector<1x32xf32> to vector<8x32xf32>
    %68 = arith.addf %66, %67 : vector<8x32xf32>
    %c0_26 = arith.constant 0 : index
    %c0_27 = arith.constant 0 : index
    %c0_28 = arith.constant 0 : index
    %69 = vector.load %arg2[%c0_26, %c0_27, %c0_28] : memref<4x16x16xbf16, #tpu.memory_space<vmem>>, vector<1x16x16xbf16>
    %70 = vector.shape_cast %69 : vector<1x16x16xbf16> to vector<16x16xbf16>
    %71 = arith.extf %70 : vector<16x16xbf16> to vector<16x16xf32>
    %cst_29 = arith.constant dense<0.000000e+00> : vector<8x16xf32>
    %72 = tpu.matmul %64, %71, %cst_29 {dimension_numbers = #tpu.dot_dimension_numbers<[1], [0], [0], [1], [0, 0, 1, 1], [], []>} : vector<8x16xf32>, vector<16x16xf32>, vector<8x16xf32> -> vector<8x16xf32>
    %cst_30 = arith.constant dense<0.000000e+00> : vector<8x8xf32>
    %73 = tpu.matmul %72, %64, %cst_30 {dimension_numbers = #tpu.dot_dimension_numbers<[1], [1], [0], [0], [0, 0, 1, 0], [], []>} : vector<8x16xf32>, vector<8x16xf32>, vector<8x8xf32> -> vector<8x8xf32>
    %cst_31 = arith.constant 0.000000e+00 : f32
    %74 = vector.broadcast %cst_31 : f32 to vector<8x8xf32>
    %75 = arith.maximumf %73, %74 : vector<8x8xf32>
    %c0_32 = arith.constant 0 : index
    %c0_33 = arith.constant 0 : index
    %c0_34 = arith.constant 0 : index
    %76 = vector.load %arg7[%c0_32, %c0_33, %c0_34] : memref<1x32x32xf32, #tpu.memory_space<vmem>>, vector<1x8x32xf32>
    %77 = vector.shape_cast %76 : vector<1x8x32xf32> to vector<8x32xf32>
    %78 = vector.shape_cast %68 : vector<8x32xf32> to vector<1x8x32xf32>
    tpu.vector_store %arg7[%c0_32, %c0_33, %c0_34], %78 {strides = array<i32>} : memref<1x32x32xf32, #tpu.memory_space<vmem>>, vector<1x8x32xf32>,
    %c0_35 = arith.constant 0 : index
    %c0_36 = arith.constant 0 : index
    %c0_37 = arith.constant 0 : index
    %79 = vector.load %arg8[%c0_35, %c0_36, %c0_37] : memref<1x32x8xf32, #tpu.memory_space<vmem>>, vector<1x8x8xf32>
    %80 = vector.shape_cast %79 : vector<1x8x8xf32> to vector<8x8xf32>
    %81 = vector.shape_cast %75 : vector<8x8xf32> to vector<1x8x8xf32>
    tpu.vector_store %arg8[%c0_35, %c0_36, %c0_37], %81 {strides = array<i32>} : memref<1x32x8xf32, #tpu.memory_space<vmem>>, vector<1x8x8xf32>,
    %c1 = arith.constant 1 : index
    %c0_38 = arith.constant 0 : index
    %c0_39 = arith.constant 0 : index
    %82 = vector.load %arg1[%c1, %c0_38, %c0_39] : memref<4x16x32xf32, #tpu.memory_space<vmem>>, vector<1x16x32xf32>
    %83 = vector.shape_cast %82 : vector<1x16x32xf32> to vector<16x32xf32>
    %cst_40 = arith.constant dense<0.000000e+00> : vector<32xf32>
    %84 = vector.multi_reduction <add>, %83, %cst_40 [0] : vector<16x32xf32> to vector<32xf32>
    %85 = vector.shape_cast %84 : vector<32xf32> to vector<1x32xf32>
    %cst_41 = arith.constant 1.600000e+01 : f32
    %86 = vector.broadcast %cst_41 : f32 to vector<1x32xf32>
    %87 = arith.divf %85, %86 : vector<1x32xf32>
    %88 = vector.broadcast %1 : vector<4x1xf32> to vector<4x32xf32>
    %89 = vector.broadcast %87 : vector<1x32xf32> to vector<4x32xf32>
    %90 = arith.mulf %88, %89 : vector<4x32xf32>
    %91 = vector.broadcast %2 : vector<4x1xf32> to vector<4x32xf32>
    %92 = arith.addf %90, %91 : vector<4x32xf32>
    %cst_42 = arith.constant 0.000000e+00 : f32
    %93 = vector.broadcast %cst_42 : f32 to vector<4x32xf32>
    %94 = arith.maximumf %92, %93 : vector<4x32xf32>
    %cst_43 = arith.constant dense<0.000000e+00> : vector<16x32xf32>
    %95 = tpu.matmul %8, %94, %cst_43 {dimension_numbers = #tpu.dot_dimension_numbers<[1], [0], [0], [1], [0, 0, 1, 1], [], []>} : vector<16x4xf32>, vector<4x32xf32>, vector<16x32xf32> -> vector<16x32xf32>
    %96 = vector.broadcast %3 : vector<16x1xf32> to vector<16x32xf32>
    %97 = arith.addf %95, %96 : vector<16x32xf32>
    %cst_44 = arith.constant 0.000000e+00 : f32
    %98 = vector.broadcast %cst_44 : f32 to vector<16x32xf32>
    %99 = arith.maximumf %97, %98 : vector<16x32xf32>
    %cst_45 = arith.constant dense<0.000000e+00> : vector<32x32xf32>
    %100 = tpu.matmul %9, %99, %cst_45 {dimension_numbers = #tpu.dot_dimension_numbers<[1], [0], [0], [1], [0, 0, 1, 1], [], []>} : vector<32x16xf32>, vector<16x32xf32>, vector<32x32xf32> -> vector<32x32xf32>
    %101 = vector.broadcast %4 : vector<32x1xf32> to vector<32x32xf32>
    %102 = arith.addf %100, %101 : vector<32x32xf32>
    %cst_46 = arith.constant 0.000000e+00 : f32
    %103 = vector.broadcast %cst_46 : f32 to vector<32x32xf32>
    %104 = arith.maximumf %102, %103 : vector<32x32xf32>
    %105 = arith.mulf %83, %83 : vector<16x32xf32>
    %cst_47 = arith.constant dense<0.000000e+00> : vector<16xf32>
    %106 = vector.multi_reduction <add>, %105, %cst_47 [1] : vector<16x32xf32> to vector<16xf32>
    %107 = vector.shape_cast %106 : vector<16xf32> to vector<16x1xf32>
    %cst_48 = arith.constant 9.99999996E-13 : f32
    %108 = vector.broadcast %cst_48 : f32 to vector<16x1xf32>
    %109 = arith.maximumf %107, %108 : vector<16x1xf32>
    %110 = math.rsqrt %109 : vector<16x1xf32>
    %111 = arith.mulf %104, %104 : vector<32x32xf32>
    %cst_49 = arith.constant dense<0.000000e+00> : vector<32xf32>
    %112 = vector.multi_reduction <add>, %111, %cst_49 [1] : vector<32x32xf32> to vector<32xf32>
    %113 = vector.shape_cast %112 : vector<32xf32> to vector<32x1xf32>
    %cst_50 = arith.constant 9.99999996E-13 : f32
    %114 = vector.broadcast %cst_50 : f32 to vector<32x1xf32>
    %115 = arith.maximumf %113, %114 : vector<32x1xf32>
    %116 = math.rsqrt %115 : vector<32x1xf32>
    %117 = vector.broadcast %116 : vector<32x1xf32> to vector<32x32xf32>
    %118 = arith.mulf %104, %117 : vector<32x32xf32>
    %119 = vector.broadcast %110 : vector<16x1xf32> to vector<16x32xf32>
    %120 = arith.mulf %83, %119 : vector<16x32xf32>
    %cst_51 = arith.constant dense<0.000000e+00> : vector<32x16xf32>
    %121 = tpu.matmul %118, %120, %cst_51 {dimension_numbers = #tpu.dot_dimension_numbers<[1], [1], [0], [0], [0, 0, 1, 0], [], []>} : vector<32x32xf32>, vector<16x32xf32>, vector<32x16xf32> -> vector<32x16xf32>
    %122 = vector.shape_cast %121 : vector<32x16xf32> to vector<4x8x16xf32>
    %cst_52 = arith.constant dense<0.000000e+00> : vector<4x16xf32>
    %123 = vector.multi_reduction <add>, %122, %cst_52 [1] : vector<4x8x16xf32> to vector<4x16xf32>
    %124 = vector.shape_cast %123 : vector<4x16xf32> to vector<4x1x16xf32>
    %cst_53 = arith.constant 1.000000e-10 : f32
    %125 = vector.broadcast %cst_53 : f32 to vector<4x1x16xf32>
    %126 = arith.addf %124, %125 : vector<4x1x16xf32>
    %127 = tpu.reciprocal %126 : vector<4x1x16xf32> -> vector<4x1x16xf32>
    %128 = vector.broadcast %5 : vector<32x1xf32> to vector<32x16xf32>
    %129 = arith.mulf %121, %128 : vector<32x16xf32>
    %130 = vector.shape_cast %129 : vector<32x16xf32> to vector<4x8x16xf32>
    %131 = vector.broadcast %127 : vector<4x1x16xf32> to vector<4x8x16xf32>
    %132 = arith.mulf %130, %131 : vector<4x8x16xf32>
    %cst_54 = arith.constant dense<0.000000e+00> : vector<8x16xf32>
    %133 = vector.multi_reduction <add>, %132, %cst_54 [0] : vector<4x8x16xf32> to vector<8x16xf32>
    %134 = vector.broadcast %6 : vector<1x1xf32> to vector<8x16xf32>
    %135 = arith.addf %133, %134 : vector<8x16xf32>
    %cst_55 = arith.constant dense<0.000000e+00> : vector<8x32xf32>
    %136 = tpu.matmul %135, %83, %cst_55 {dimension_numbers = #tpu.dot_dimension_numbers<[1], [0], [0], [1], [0, 0, 1, 1], [], []>} : vector<8x16xf32>, vector<16x32xf32>, vector<8x32xf32> -> vector<8x32xf32>
    %cst_56 = arith.constant dense<0.000000e+00> : vector<8x32xf32>
    %137 = tpu.matmul %136, %10, %cst_56 {dimension_numbers = #tpu.dot_dimension_numbers<[1], [1], [0], [0], [0, 0, 1, 0], [], []>} : vector<8x32xf32>, vector<32x32xf32>, vector<8x32xf32> -> vector<8x32xf32>
    %138 = vector.broadcast %7 : vector<1x32xf32> to vector<8x32xf32>
    %139 = arith.addf %137, %138 : vector<8x32xf32>
    %c1_57 = arith.constant 1 : index
    %c0_58 = arith.constant 0 : index
    %c0_59 = arith.constant 0 : index
    %140 = vector.load %arg2[%c1_57, %c0_58, %c0_59] : memref<4x16x16xbf16, #tpu.memory_space<vmem>>, vector<1x16x16xbf16>
    %141 = vector.shape_cast %140 : vector<1x16x16xbf16> to vector<16x16xbf16>
    %142 = arith.extf %141 : vector<16x16xbf16> to vector<16x16xf32>
    %cst_60 = arith.constant dense<0.000000e+00> : vector<8x16xf32>
    %143 = tpu.matmul %135, %142, %cst_60 {dimension_numbers = #tpu.dot_dimension_numbers<[1], [0], [0], [1], [0, 0, 1, 1], [], []>} : vector<8x16xf32>, vector<16x16xf32>, vector<8x16xf32> -> vector<8x16xf32>
    %cst_61 = arith.constant dense<0.000000e+00> : vector<8x8xf32>
    %144 = tpu.matmul %143, %135, %cst_61 {dimension_numbers = #tpu.dot_dimension_numbers<[1], [1], [0], [0], [0, 0, 1, 0], [], []>} : vector<8x16xf32>, vector<8x16xf32>, vector<8x8xf32> -> vector<8x8xf32>
    %cst_62 = arith.constant 0.000000e+00 : f32
    %145 = vector.broadcast %cst_62 : f32 to vector<8x8xf32>
    %146 = arith.maximumf %144, %145 : vector<8x8xf32>
    %c0_63 = arith.constant 0 : index
    %c8 = arith.constant 8 : index
    %c0_64 = arith.constant 0 : index
    %147 = vector.load %arg7[%c0_63, %c8, %c0_64] : memref<1x32x32xf32, #tpu.memory_space<vmem>>, vector<1x8x32xf32>
    %148 = vector.shape_cast %147 : vector<1x8x32xf32> to vector<8x32xf32>
    %149 = vector.shape_cast %139 : vector<8x32xf32> to vector<1x8x32xf32>
    tpu.vector_store %arg7[%c0_63, %c8, %c0_64], %149 {strides = array<i32>} : memref<1x32x32xf32, #tpu.memory_space<vmem>>, vector<1x8x32xf32>,
    %c0_65 = arith.constant 0 : index
    %c8_66 = arith.constant 8 : index
    %c0_67 = arith.constant 0 : index
    %150 = vector.load %arg8[%c0_65, %c8_66, %c0_67] : memref<1x32x8xf32, #tpu.memory_space<vmem>>, vector<1x8x8xf32>
    %151 = vector.shape_cast %150 : vector<1x8x8xf32> to vector<8x8xf32>
    %152 = vector.shape_cast %146 : vector<8x8xf32> to vector<1x8x8xf32>
    tpu.vector_store %arg8[%c0_65, %c8_66, %c0_67], %152 {strides = array<i32>} : memref<1x32x8xf32, #tpu.memory_space<vmem>>, vector<1x8x8xf32>,
    %c2 = arith.constant 2 : index
    %c0_68 = arith.constant 0 : index
    %c0_69 = arith.constant 0 : index
    %153 = vector.load %arg1[%c2, %c0_68, %c0_69] : memref<4x16x32xf32, #tpu.memory_space<vmem>>, vector<1x16x32xf32>
    %154 = vector.shape_cast %153 : vector<1x16x32xf32> to vector<16x32xf32>
    %cst_70 = arith.constant dense<0.000000e+00> : vector<32xf32>
    %155 = vector.multi_reduction <add>, %154, %cst_70 [0] : vector<16x32xf32> to vector<32xf32>
    %156 = vector.shape_cast %155 : vector<32xf32> to vector<1x32xf32>
    %cst_71 = arith.constant 1.600000e+01 : f32
    %157 = vector.broadcast %cst_71 : f32 to vector<1x32xf32>
    %158 = arith.divf %156, %157 : vector<1x32xf32>
    %159 = vector.broadcast %1 : vector<4x1xf32> to vector<4x32xf32>
    %160 = vector.broadcast %158 : vector<1x32xf32> to vector<4x32xf32>
    %161 = arith.mulf %159, %160 : vector<4x32xf32>
    %162 = vector.broadcast %2 : vector<4x1xf32> to vector<4x32xf32>
    %163 = arith.addf %161, %162 : vector<4x32xf32>
    %cst_72 = arith.constant 0.000000e+00 : f32
    %164 = vector.broadcast %cst_72 : f32 to vector<4x32xf32>
    %165 = arith.maximumf %163, %164 : vector<4x32xf32>
    %cst_73 = arith.constant dense<0.000000e+00> : vector<16x32xf32>
    %166 = tpu.matmul %8, %165, %cst_73 {dimension_numbers = #tpu.dot_dimension_numbers<[1], [0], [0], [1], [0, 0, 1, 1], [], []>} : vector<16x4xf32>, vector<4x32xf32>, vector<16x32xf32> -> vector<16x32xf32>
    %167 = vector.broadcast %3 : vector<16x1xf32> to vector<16x32xf32>
    %168 = arith.addf %166, %167 : vector<16x32xf32>
    %cst_74 = arith.constant 0.000000e+00 : f32
    %169 = vector.broadcast %cst_74 : f32 to vector<16x32xf32>
    %170 = arith.maximumf %168, %169 : vector<16x32xf32>
    %cst_75 = arith.constant dense<0.000000e+00> : vector<32x32xf32>
    %171 = tpu.matmul %9, %170, %cst_75 {dimension_numbers = #tpu.dot_dimension_numbers<[1], [0], [0], [1], [0, 0, 1, 1], [], []>} : vector<32x16xf32>, vector<16x32xf32>, vector<32x32xf32> -> vector<32x32xf32>
    %172 = vector.broadcast %4 : vector<32x1xf32> to vector<32x32xf32>
    %173 = arith.addf %171, %172 : vector<32x32xf32>
    %cst_76 = arith.constant 0.000000e+00 : f32
    %174 = vector.broadcast %cst_76 : f32 to vector<32x32xf32>
    %175 = arith.maximumf %173, %174 : vector<32x32xf32>
    %176 = arith.mulf %154, %154 : vector<16x32xf32>
    %cst_77 = arith.constant dense<0.000000e+00> : vector<16xf32>
    %177 = vector.multi_reduction <add>, %176, %cst_77 [1] : vector<16x32xf32> to vector<16xf32>
    %178 = vector.shape_cast %177 : vector<16xf32> to vector<16x1xf32>
    %cst_78 = arith.constant 9.99999996E-13 : f32
    %179 = vector.broadcast %cst_78 : f32 to vector<16x1xf32>
    %180 = arith.maximumf %178, %179 : vector<16x1xf32>
    %181 = math.rsqrt %180 : vector<16x1xf32>
    %182 = arith.mulf %175, %175 : vector<32x32xf32>
    %cst_79 = arith.constant dense<0.000000e+00> : vector<32xf32>
    %183 = vector.multi_reduction <add>, %182, %cst_79 [1] : vector<32x32xf32> to vector<32xf32>
    %184 = vector.shape_cast %183 : vector<32xf32> to vector<32x1xf32>
    %cst_80 = arith.constant 9.99999996E-13 : f32
    %185 = vector.broadcast %cst_80 : f32 to vector<32x1xf32>
    %186 = arith.maximumf %184, %185 : vector<32x1xf32>
    %187 = math.rsqrt %186 : vector<32x1xf32>
    %188 = vector.broadcast %187 : vector<32x1xf32> to vector<32x32xf32>
    %189 = arith.mulf %175, %188 : vector<32x32xf32>
    %190 = vector.broadcast %181 : vector<16x1xf32> to vector<16x32xf32>
    %191 = arith.mulf %154, %190 : vector<16x32xf32>
    %cst_81 = arith.constant dense<0.000000e+00> : vector<32x16xf32>
    %192 = tpu.matmul %189, %191, %cst_81 {dimension_numbers = #tpu.dot_dimension_numbers<[1], [1], [0], [0], [0, 0, 1, 0], [], []>} : vector<32x32xf32>, vector<16x32xf32>, vector<32x16xf32> -> vector<32x16xf32>
    %193 = vector.shape_cast %192 : vector<32x16xf32> to vector<4x8x16xf32>
    %cst_82 = arith.constant dense<0.000000e+00> : vector<4x16xf32>
    %194 = vector.multi_reduction <add>, %193, %cst_82 [1] : vector<4x8x16xf32> to vector<4x16xf32>
    %195 = vector.shape_cast %194 : vector<4x16xf32> to vector<4x1x16xf32>
    %cst_83 = arith.constant 1.000000e-10 : f32
    %196 = vector.broadcast %cst_83 : f32 to vector<4x1x16xf32>
    %197 = arith.addf %195, %196 : vector<4x1x16xf32>
    %198 = tpu.reciprocal %197 : vector<4x1x16xf32> -> vector<4x1x16xf32>
    %199 = vector.broadcast %5 : vector<32x1xf32> to vector<32x16xf32>
    %200 = arith.mulf %192, %199 : vector<32x16xf32>
    %201 = vector.shape_cast %200 : vector<32x16xf32> to vector<4x8x16xf32>
    %202 = vector.broadcast %198 : vector<4x1x16xf32> to vector<4x8x16xf32>
    %203 = arith.mulf %201, %202 : vector<4x8x16xf32>
    %cst_84 = arith.constant dense<0.000000e+00> : vector<8x16xf32>
    %204 = vector.multi_reduction <add>, %203, %cst_84 [0] : vector<4x8x16xf32> to vector<8x16xf32>
    %205 = vector.broadcast %6 : vector<1x1xf32> to vector<8x16xf32>
    %206 = arith.addf %204, %205 : vector<8x16xf32>
    %cst_85 = arith.constant dense<0.000000e+00> : vector<8x32xf32>
    %207 = tpu.matmul %206, %154, %cst_85 {dimension_numbers = #tpu.dot_dimension_numbers<[1], [0], [0], [1], [0, 0, 1, 1], [], []>} : vector<8x16xf32>, vector<16x32xf32>, vector<8x32xf32> -> vector<8x32xf32>
    %cst_86 = arith.constant dense<0.000000e+00> : vector<8x32xf32>
    %208 = tpu.matmul %207, %10, %cst_86 {dimension_numbers = #tpu.dot_dimension_numbers<[1], [1], [0], [0], [0, 0, 1, 0], [], []>} : vector<8x32xf32>, vector<32x32xf32>, vector<8x32xf32> -> vector<8x32xf32>
    %209 = vector.broadcast %7 : vector<1x32xf32> to vector<8x32xf32>
    %210 = arith.addf %208, %209 : vector<8x32xf32>
    %c2_87 = arith.constant 2 : index
    %c0_88 = arith.constant 0 : index
    %c0_89 = arith.constant 0 : index
    %211 = vector.load %arg2[%c2_87, %c0_88, %c0_89] : memref<4x16x16xbf16, #tpu.memory_space<vmem>>, vector<1x16x16xbf16>
    %212 = vector.shape_cast %211 : vector<1x16x16xbf16> to vector<16x16xbf16>
    %213 = arith.extf %212 : vector<16x16xbf16> to vector<16x16xf32>
    %cst_90 = arith.constant dense<0.000000e+00> : vector<8x16xf32>
    %214 = tpu.matmul %206, %213, %cst_90 {dimension_numbers = #tpu.dot_dimension_numbers<[1], [0], [0], [1], [0, 0, 1, 1], [], []>} : vector<8x16xf32>, vector<16x16xf32>, vector<8x16xf32> -> vector<8x16xf32>
    %cst_91 = arith.constant dense<0.000000e+00> : vector<8x8xf32>
    %215 = tpu.matmul %214, %206, %cst_91 {dimension_numbers = #tpu.dot_dimension_numbers<[1], [1], [0], [0], [0, 0, 1, 0], [], []>} : vector<8x16xf32>, vector<8x16xf32>, vector<8x8xf32> -> vector<8x8xf32>
    %cst_92 = arith.constant 0.000000e+00 : f32
    %216 = vector.broadcast %cst_92 : f32 to vector<8x8xf32>
    %217 = arith.maximumf %215, %216 : vector<8x8xf32>
    %c0_93 = arith.constant 0 : index
    %c16 = arith.constant 16 : index
    %c0_94 = arith.constant 0 : index
    %218 = vector.load %arg7[%c0_93, %c16, %c0_94] : memref<1x32x32xf32, #tpu.memory_space<vmem>>, vector<1x8x32xf32>
    %219 = vector.shape_cast %218 : vector<1x8x32xf32> to vector<8x32xf32>
    %220 = vector.shape_cast %210 : vector<8x32xf32> to vector<1x8x32xf32>
    tpu.vector_store %arg7[%c0_93, %c16, %c0_94], %220 {strides = array<i32>} : memref<1x32x32xf32, #tpu.memory_space<vmem>>, vector<1x8x32xf32>,
    %c0_95 = arith.constant 0 : index
    %c16_96 = arith.constant 16 : index
    %c0_97 = arith.constant 0 : index
    %221 = vector.load %arg8[%c0_95, %c16_96, %c0_97] : memref<1x32x8xf32, #tpu.memory_space<vmem>>, vector<1x8x8xf32>
    %222 = vector.shape_cast %221 : vector<1x8x8xf32> to vector<8x8xf32>
    %223 = vector.shape_cast %217 : vector<8x8xf32> to vector<1x8x8xf32>
    tpu.vector_store %arg8[%c0_95, %c16_96, %c0_97], %223 {strides = array<i32>} : memref<1x32x8xf32, #tpu.memory_space<vmem>>, vector<1x8x8xf32>,
    %c3 = arith.constant 3 : index
    %c0_98 = arith.constant 0 : index
    %c0_99 = arith.constant 0 : index
    %224 = vector.load %arg1[%c3, %c0_98, %c0_99] : memref<4x16x32xf32, #tpu.memory_space<vmem>>, vector<1x16x32xf32>
    %225 = vector.shape_cast %224 : vector<1x16x32xf32> to vector<16x32xf32>
    %cst_100 = arith.constant dense<0.000000e+00> : vector<32xf32>
    %226 = vector.multi_reduction <add>, %225, %cst_100 [0] : vector<16x32xf32> to vector<32xf32>
    %227 = vector.shape_cast %226 : vector<32xf32> to vector<1x32xf32>
    %cst_101 = arith.constant 1.600000e+01 : f32
    %228 = vector.broadcast %cst_101 : f32 to vector<1x32xf32>
    %229 = arith.divf %227, %228 : vector<1x32xf32>
    %230 = vector.broadcast %1 : vector<4x1xf32> to vector<4x32xf32>
    %231 = vector.broadcast %229 : vector<1x32xf32> to vector<4x32xf32>
    %232 = arith.mulf %230, %231 : vector<4x32xf32>
    %233 = vector.broadcast %2 : vector<4x1xf32> to vector<4x32xf32>
    %234 = arith.addf %232, %233 : vector<4x32xf32>
    %cst_102 = arith.constant 0.000000e+00 : f32
    %235 = vector.broadcast %cst_102 : f32 to vector<4x32xf32>
    %236 = arith.maximumf %234, %235 : vector<4x32xf32>
    %cst_103 = arith.constant dense<0.000000e+00> : vector<16x32xf32>
    %237 = tpu.matmul %8, %236, %cst_103 {dimension_numbers = #tpu.dot_dimension_numbers<[1], [0], [0], [1], [0, 0, 1, 1], [], []>} : vector<16x4xf32>, vector<4x32xf32>, vector<16x32xf32> -> vector<16x32xf32>
    %238 = vector.broadcast %3 : vector<16x1xf32> to vector<16x32xf32>
    %239 = arith.addf %237, %238 : vector<16x32xf32>
    %cst_104 = arith.constant 0.000000e+00 : f32
    %240 = vector.broadcast %cst_104 : f32 to vector<16x32xf32>
    %241 = arith.maximumf %239, %240 : vector<16x32xf32>
    %cst_105 = arith.constant dense<0.000000e+00> : vector<32x32xf32>
    %242 = tpu.matmul %9, %241, %cst_105 {dimension_numbers = #tpu.dot_dimension_numbers<[1], [0], [0], [1], [0, 0, 1, 1], [], []>} : vector<32x16xf32>, vector<16x32xf32>, vector<32x32xf32> -> vector<32x32xf32>
    %243 = vector.broadcast %4 : vector<32x1xf32> to vector<32x32xf32>
    %244 = arith.addf %242, %243 : vector<32x32xf32>
    %cst_106 = arith.constant 0.000000e+00 : f32
    %245 = vector.broadcast %cst_106 : f32 to vector<32x32xf32>
    %246 = arith.maximumf %244, %245 : vector<32x32xf32>
    %247 = arith.mulf %225, %225 : vector<16x32xf32>
    %cst_107 = arith.constant dense<0.000000e+00> : vector<16xf32>
    %248 = vector.multi_reduction <add>, %247, %cst_107 [1] : vector<16x32xf32> to vector<16xf32>
    %249 = vector.shape_cast %248 : vector<16xf32> to vector<16x1xf32>
    %cst_108 = arith.constant 9.99999996E-13 : f32
    %250 = vector.broadcast %cst_108 : f32 to vector<16x1xf32>
    %251 = arith.maximumf %249, %250 : vector<16x1xf32>
    %252 = math.rsqrt %251 : vector<16x1xf32>
    %253 = arith.mulf %246, %246 : vector<32x32xf32>
    %cst_109 = arith.constant dense<0.000000e+00> : vector<32xf32>
    %254 = vector.multi_reduction <add>, %253, %cst_109 [1] : vector<32x32xf32> to vector<32xf32>
    %255 = vector.shape_cast %254 : vector<32xf32> to vector<32x1xf32>
    %cst_110 = arith.constant 9.99999996E-13 : f32
    %256 = vector.broadcast %cst_110 : f32 to vector<32x1xf32>
    %257 = arith.maximumf %255, %256 : vector<32x1xf32>
    %258 = math.rsqrt %257 : vector<32x1xf32>
    %259 = vector.broadcast %258 : vector<32x1xf32> to vector<32x32xf32>
    %260 = arith.mulf %246, %259 : vector<32x32xf32>
    %261 = vector.broadcast %252 : vector<16x1xf32> to vector<16x32xf32>
    %262 = arith.mulf %225, %261 : vector<16x32xf32>
    %cst_111 = arith.constant dense<0.000000e+00> : vector<32x16xf32>
    %263 = tpu.matmul %260, %262, %cst_111 {dimension_numbers = #tpu.dot_dimension_numbers<[1], [1], [0], [0], [0, 0, 1, 0], [], []>} : vector<32x32xf32>, vector<16x32xf32>, vector<32x16xf32> -> vector<32x16xf32>
    %264 = vector.shape_cast %263 : vector<32x16xf32> to vector<4x8x16xf32>
    %cst_112 = arith.constant dense<0.000000e+00> : vector<4x16xf32>
    %265 = vector.multi_reduction <add>, %264, %cst_112 [1] : vector<4x8x16xf32> to vector<4x16xf32>
    %266 = vector.shape_cast %265 : vector<4x16xf32> to vector<4x1x16xf32>
    %cst_113 = arith.constant 1.000000e-10 : f32
    %267 = vector.broadcast %cst_113 : f32 to vector<4x1x16xf32>
    %268 = arith.addf %266, %267 : vector<4x1x16xf32>
    %269 = tpu.reciprocal %268 : vector<4x1x16xf32> -> vector<4x1x16xf32>
    %270 = vector.broadcast %5 : vector<32x1xf32> to vector<32x16xf32>
    %271 = arith.mulf %263, %270 : vector<32x16xf32>
    %272 = vector.shape_cast %271 : vector<32x16xf32> to vector<4x8x16xf32>
    %273 = vector.broadcast %269 : vector<4x1x16xf32> to vector<4x8x16xf32>
    %274 = arith.mulf %272, %273 : vector<4x8x16xf32>
    %cst_114 = arith.constant dense<0.000000e+00> : vector<8x16xf32>
    %275 = vector.multi_reduction <add>, %274, %cst_114 [0] : vector<4x8x16xf32> to vector<8x16xf32>
    %276 = vector.broadcast %6 : vector<1x1xf32> to vector<8x16xf32>
    %277 = arith.addf %275, %276 : vector<8x16xf32>
    %cst_115 = arith.constant dense<0.000000e+00> : vector<8x32xf32>
    %278 = tpu.matmul %277, %225, %cst_115 {dimension_numbers = #tpu.dot_dimension_numbers<[1], [0], [0], [1], [0, 0, 1, 1], [], []>} : vector<8x16xf32>, vector<16x32xf32>, vector<8x32xf32> -> vector<8x32xf32>
    %cst_116 = arith.constant dense<0.000000e+00> : vector<8x32xf32>
    %279 = tpu.matmul %278, %10, %cst_116 {dimension_numbers = #tpu.dot_dimension_numbers<[1], [1], [0], [0], [0, 0, 1, 0], [], []>} : vector<8x32xf32>, vector<32x32xf32>, vector<8x32xf32> -> vector<8x32xf32>
    %280 = vector.broadcast %7 : vector<1x32xf32> to vector<8x32xf32>
    %281 = arith.addf %279, %280 : vector<8x32xf32>
    %c3_117 = arith.constant 3 : index
    %c0_118 = arith.constant 0 : index
    %c0_119 = arith.constant 0 : index
    %282 = vector.load %arg2[%c3_117, %c0_118, %c0_119] : memref<4x16x16xbf16, #tpu.memory_space<vmem>>, vector<1x16x16xbf16>
    %283 = vector.shape_cast %282 : vector<1x16x16xbf16> to vector<16x16xbf16>
    %284 = arith.extf %283 : vector<16x16xbf16> to vector<16x16xf32>
    %cst_120 = arith.constant dense<0.000000e+00> : vector<8x16xf32>
    %285 = tpu.matmul %277, %284, %cst_120 {dimension_numbers = #tpu.dot_dimension_numbers<[1], [0], [0], [1], [0, 0, 1, 1], [], []>} : vector<8x16xf32>, vector<16x16xf32>, vector<8x16xf32> -> vector<8x16xf32>
    %cst_121 = arith.constant dense<0.000000e+00> : vector<8x8xf32>
    %286 = tpu.matmul %285, %277, %cst_121 {dimension_numbers = #tpu.dot_dimension_numbers<[1], [1], [0], [0], [0, 0, 1, 0], [], []>} : vector<8x16xf32>, vector<8x16xf32>, vector<8x8xf32> -> vector<8x8xf32>
    %cst_122 = arith.constant 0.000000e+00 : f32
    %287 = vector.broadcast %cst_122 : f32 to vector<8x8xf32>
    %288 = arith.maximumf %286, %287 : vector<8x8xf32>
    %c0_123 = arith.constant 0 : index
    %c24 = arith.constant 24 : index
    %c0_124 = arith.constant 0 : index
    %289 = vector.load %arg7[%c0_123, %c24, %c0_124] : memref<1x32x32xf32, #tpu.memory_space<vmem>>, vector<1x8x32xf32>
    %290 = vector.shape_cast %289 : vector<1x8x32xf32> to vector<8x32xf32>
    %291 = vector.shape_cast %281 : vector<8x32xf32> to vector<1x8x32xf32>
    tpu.vector_store %arg7[%c0_123, %c24, %c0_124], %291 {strides = array<i32>} : memref<1x32x32xf32, #tpu.memory_space<vmem>>, vector<1x8x32xf32>,
    %c0_125 = arith.constant 0 : index
    %c24_126 = arith.constant 24 : index
    %c0_127 = arith.constant 0 : index
    %292 = vector.load %arg8[%c0_125, %c24_126, %c0_127] : memref<1x32x8xf32, #tpu.memory_space<vmem>>, vector<1x8x8xf32>
    %293 = vector.shape_cast %292 : vector<1x8x8xf32> to vector<8x8xf32>
    %294 = vector.shape_cast %288 : vector<8x8xf32> to vector<1x8x8xf32>
    tpu.vector_store %arg8[%c0_125, %c24_126, %c0_127], %294 {strides = array<i32>} : memref<1x32x8xf32, #tpu.memory_space<vmem>>, vector<1x8x8xf32>,
    return
  }
  func.func @transform_0(%arg0: i32) -> (i32, i32, i32) {
    %c0_i32 = arith.constant 0 : i32
    %c0_i32_0 = arith.constant 0 : i32
    %c0_i32_1 = arith.constant 0 : i32
    return %arg0, %c0_i32, %c0_i32_0 : i32, i32, i32
  }
  func.func @transform_1(%arg0: i32) -> (i32, i32, i32) {
    %c0_i32 = arith.constant 0 : i32
    %c0_i32_0 = arith.constant 0 : i32
    %c0_i32_1 = arith.constant 0 : i32
    return %arg0, %c0_i32, %c0_i32_0 : i32, i32, i32
  }
  func.func @transform_2(%arg0: i32) -> (i32, i32) {
    %c0_i32 = arith.constant 0 : i32
    %c0_i32_0 = arith.constant 0 : i32
    %c0_i32_1 = arith.constant 0 : i32
    return %c0_i32, %c0_i32_0 : i32, i32
  }
  func.func @transform_3(%arg0: i32) -> (i32, i32) {
    %c0_i32 = arith.constant 0 : i32
    %c0_i32_0 = arith.constant 0 : i32
    %c0_i32_1 = arith.constant 0 : i32
    return %c0_i32, %c0_i32_0 : i32, i32
  }
  func.func @transform_4(%arg0: i32) -> (i32, i32) {
    %c0_i32 = arith.constant 0 : i32
    %c0_i32_0 = arith.constant 0 : i32
    %c0_i32_1 = arith.constant 0 : i32
    return %c0_i32, %c0_i32_0 : i32, i32
  }
  func.func @transform_5(%arg0: i32) -> (i32, i32) {
    %c0_i32 = arith.constant 0 : i32
    %c0_i32_0 = arith.constant 0 : i32
    %c0_i32_1 = arith.constant 0 : i32
    return %c0_i32, %c0_i32_0 : i32, i32
  }
  func.func @transform_6(%arg0: i32) -> (i32, i32, i32) {
    %c0_i32 = arith.constant 0 : i32
    %c0_i32_0 = arith.constant 0 : i32
    %c0_i32_1 = arith.constant 0 : i32
    return %arg0, %c0_i32, %c0_i32_0 : i32, i32, i32
  }
  func.func @transform_7(%arg0: i32) -> (i32, i32, i32) {
    %c0_i32 = arith.constant 0 : i32
    %c0_i32_0 = arith.constant 0 : i32
    %c0_i32_1 = arith.constant 0 : i32
    return %arg0, %c0_i32, %c0_i32_0 : i32, i32, i32
  }
}

</mosaic_0001>

<bundles_post_ra>
// kernel: pooling_layers_forward.1
= control target key start
LH: loop header
LB: loop body
LE: loop exit
PB: predicated region body
PF: predicated region fallthrough
CT: control target
= control target key end

     0   :  { %13 = vsyncpa [#allocation3], 0  ;;  %s4775_s0 = inlined_call_operand.vmem [shape: f32[8,16,32], index: 0, kind: input, shape index: {}]   ;;  %s4776_s1 = inlined_call_operand.vmem [shape: bf16[8,16,16], index: 1, kind: input, shape index: {}]   ;;  %s4777_s2 = inlined_call_operand.vmem [shape: f32[16,4], index: 2, kind: input, shape index: {}]   ;;  %s4778_s3 = inlined_call_operand.vmem [shape: f32[32,16], index: 3, kind: input, shape index: {}]   ;;  %s4779_s4 = inlined_call_operand.vmem [shape: f32[32,32], index: 4, kind: input, shape index: {}]   ;;  %s4780_s5 = inlined_call_operand.vmem [shape: f32[32,40], index: 5, kind: input, shape index: {}]   ;;  %s4781_s6 = inlined_call_operand.vmem [shape: f32[2,32,32], index: 6, kind: output, shape index: {0}]   ;;  %s4782_s7 = inlined_call_operand.hbm [shape: f32[2,32,8], index: 7, kind: output, shape index: {1}]  }
   0x1   :  { %15 = vsyncpa [#allocation3 + $0x1], 0  ;;  %s4103_s24 = smov 0   ;;  %s4105_s25 = smov 0  }
   0x2   :  { %s4107_s26 = smov 0   ;;  %s4109_s27 = smov 0  }
   0x3 LB: > { %s4124_s28 = sadd.s32 4294967295, %s4048_s27   ;;  %s3270_s29 = sadd.s32 4294967294, %s4048_s27   ;;  %s4048_s27 = sphi %s4109_s27, %s4790_s27   ;;  %s4044_s26 = sphi %s4107_s26, %s4789_s26   ;;  %s4040_s25 = sphi %s4105_s25, %s4788_s25   ;;  %s4036_s24 = sphi %s4103_s24, %s4787_s24  }
   0x4   : > { %s4128_s30 = sadd.s32 1, %s4048_s27   ;;  %s190_s8 = sadd.s32 1, %s4044_s26 }
   0x5   : > { %s187_s9 = ssub.s32 %s4048_s27, %s4128_s30  ;;  %p200_p0 = scmp.ne.s32.totalorder %s4044_s26, %s4040_s25 }
   0x6   : > { %p188_p1 = scmp.eq.s32.totalorder %s187_s9, 0  ;;  %p201_p2 = scmp.eq.s32.totalorder %s4124_s28, 1 }
   0x7   : > { %p206_p3 = scmp.ne.s32.totalorder %s4040_s25, %s4036_s24  ;;  %p207_p4 = scmp.eq.s32.totalorder %s3270_s29, 1 }
   0x8   : > { %s4139_s10 = scalar_select %p188_p1, %s4044_s26, %s190_s8  }
   0x9   : > { %p4141_p5 = por %p201_p2, %p200_p0  ;;  %p4145_p6 = por %p207_p4, %p206_p3 }
   0xa   : > { %p3273_p7 = scmp.ge.s32.totalorder %s4048_s27, 1  ;;  %p257_p8 = scmp.lt.s32.totalorder %s4048_s27, 3 }
   0xc   : > { %p258_p9 = pnand %p3273_p7, %p257_p8 }
   0xd   : > { %v4154_v0 = vld [vmem:[%s4780_s5] sm:$0xff] (!%p258_p9)  ;;  %v4050_v1 = vmov (!%p258_p9), 0   ;;  %v4051_v2 = vmov (!%p258_p9), 1   ;;  %vm369_vm0 = vcmask (!%p258_p9), 31744   ;;  %v4052_v4 = vmov (!%p258_p9), 2   ;;  %v4169_v5 = vld [vmem:[%s4780_s5 + $0x8] sm:$0xff] (!%p258_p9) }
   0xe   : > { %261 = sbr.rel (%p258_p9) target bundleno = 4681 (0x1249), region = 44  ;;  %3892 = vset.pattern.permute.xlu0 (!%p258_p9), %v4050_v1  ;;  %v4161_v3 = vld [vmem:[%s4777_s2] sm:$0xff] (!%p258_p9)  ;;  %3894 = vset.pattern.permute.xlu1 (!%p258_p9), %v4052_v4  ;;  %s3275_s19 = sshll.u32 (!%p258_p9), %s4124_s28, 2  ;;  %vm336_vm1 = vcmask (!%p258_p9), 261120   ;;  %vm376_vm2 = vcmask (!%p258_p9), 1043456   ;;  %v4200_v23 = vld [vmem:[%s4777_s2 + $0x8] sm:$0xff] (!%p258_p9) }
   0xf   : > { %350 = vperm.xlu0 (!%p258_p9), %3892, %v4154_v0   ;;  %3525 = vmatprep.mubr.msk.f32.mxu1 (!%p258_p9), %vm369_vm0, %v4161_v3  ;;  %p302_p10 = scmp.lt.s32.totalorder (!%p258_p9), %s3275_s19, 7  ;;  %v4209_v24 = vld [vmem:[%s4778_s3] sm:$0xff] (!%p258_p9)  ;;  %vm475_vm3 = vcmask (!%p258_p9), 130048   ;;  %v4053_v25 = vmov (!%p258_p9), 3   ;;  %v4218_v26 = vld [vmem:[%s4780_s5 + $0x10] sm:$0xff] (!%p258_p9)  ;;  %v4224_v27 = vld [vmem:[%s4780_s5 + $0x18] sm:$0xff] (!%p258_p9) }
  0x10   : > { %361 = vperm.xlu1 (!%p258_p9), %3894, %v4154_v0   ;;  %v4236_v37 = vld [vmem:[%s4778_s3 + $0x8] sm:$0xff] (!%p258_p9)  ;;  %v4241_v38 = vld [vmem:[%s4778_s3 + $0x10] sm:$0xff] (!%p258_p9)  ;;  %v4250_v39 = vld [vmem:[%s4778_s3 + $0x18] sm:$0xff] (!%p258_p9)  ;;  %s4054_s9 = smov (!%p258_p9), 123   ;;  %vm4057_vm5 = vmmov (!%p258_p9), 0   ;;  %vm1110_vm6 = vcmask (!%p258_p9), 64512  }
  0x11   : > { %vm4284_vm4 = vmpackc.low (!%p258_p9), %vm336_vm1, %vm336_vm1  ;;  %s4059_s18 = smov (!%p258_p9), 120   ;;  %p315_p11 = scmp.lt.s32.totalorder (!%p258_p9), %s4124_s28, 1 }
  0x13   : > { %3893 = vset.pattern.permute.xlu0 (!%p258_p9), %v4051_v2 }
  0x14   : > { %355 = vperm.xlu0 (!%p258_p9), %3893, %v4154_v0   ;;  %366 = vperm.xlu1 (!%p258_p9), %3894, %v4169_v5  }
  0x15   : > { %s4792_s19 = smov (!%p302_p10, %s3275_s19), 7 }
  0x16   : > { %s3388_s20 = sshll.u32 %s4792_s19, 4  ;;  %s3389_s29 = sshll.u32 %s4792_s19, 3 }
  0x17   : > { %s4179_s23 = scalar_lea.vmem %s4775_s0, %s3388_s20  ;;  %s4370_s13 = scalar_lea.vmem %s4776_s1, %s3389_s29 }
  0x18   : > { %v4182_v6 = vld [vmem:[%s4179_s23] sm:$0xff]  ;;  %v4185_v7 = vld [vmem:[%s4179_s23 + $0x8] sm:$0xff]  ;;  %3895 = vset.pattern.permute.xlu1 %v4053_v25  ;;  %3896 = vset.pattern.permute.xlu0 %v4053_v25  ;;  %s298_s19 = sand.u32 1, %s4040_s25  }
  0x19   : > { %v337_v8 = vsel %vm336_vm1, %v4182_v6, 0.0  ;;  %v338_v9 = vsel %vm336_vm1, %v4185_v7, 0.0  ;;  %458 = vperm.xlu1 %3895, %v4154_v0   ;;  %462 = vperm.xlu0 %3896, %v4169_v5   ;;  %v578_v40 = vmul.f32 %v4185_v7, %v4185_v7  ;;  %v577_v41 = vmul.f32 %v4182_v6, %v4182_v6  ;;  %s3274_s14 = sshll.u32 %s298_s19, 5  ;;  %s4734_s17 = scalar_lea.sflag [#allocation3], %s298_s19 }
  0x1a   : > { %v339_v10 = vadd.f32 %v338_v9, %v337_v8  ;;  %s4399_s15 = scalar_lea.vmem [#allocation2], %s3274_s14 }
  0x1b   : > { %v582_v42 = vsel %vm336_vm1, %v578_v40, 0.0  ;;  %v579_v43 = vsel %vm336_vm1, %v577_v41, 0.0  ;;  %s316_s20 = scalar_select %p315_p11, %s4124_s28, 1 }
  0x1c   : > { %v340_v11 = vrot.slane %v339_v10, 4 }
  0x1d   : > { %467 = vperm.xlu1 %3895, %v4218_v26   ;;  %s3390_s21 = sshll.u32 %s316_s20, 5 }
  0x1e   : > { %v341_v12 = vadd.f32 %v340_v11, %v339_v10  ;;  %s4659_s8 = scalar_lea.vmem %s4781_s6, %s3390_s21 }
  0x20   : > { %v342_v13 = vrot.slane %v341_v12, 2 }
  0x21   : > { %472 = vperm.xlu1 %3895, %v4224_v27  }
  0x22   : > { %v343_v14 = vadd.f32 %v342_v13, %v341_v12 }
  0x24   : > { %v344_v15 = vrot.slane %v343_v14, 1 }
  0x26   : > { %v345_v16 = vadd.f32 %v344_v15, %v343_v14 }
  0x28   : > { %v347_v18 = vmul.f32 0.0625, %v345_v16 }
  0x38   : > { %580 = vadd.xlane.f32.xlu0 %v579_v43 }
  0x45   : > { %583 = vadd.xlane.f32.xlu1 %v582_v42 }
  0x8e   : > { %v4191_v17 = vpop.permute.xlu0 %350 }
  0x8f   : > { %v353_v19 = vmul.f32 %v4191_v17, %v347_v18  ;;  %v4227_v28 = vpop.permute.xlu1 %361 }
  0x93   : > { %v4194_v20 = vpop.permute.xlu0 %355  ;;  %v4229_v29 = vpop.permute.xlu1 %366 }
  0x94   : > { %v358_v21 = vadd.f32 %v4194_v20, %v353_v19 }
  0x96   : > { %v359_v22 = vmax.f32 %v358_v21, 0.0  ;;  %v4055_v21 = vmov 4  }
  0x97   : > { %3897 = vset.pattern.permute.xlu0 %v4055_v21  ;;  %3898 = vset.pattern.permute.xlu1 %v4055_v21 }
  0x98   : > { %3523 = vmatprep.subr.msk.mxu1 %vm376_vm2, %v359_v22  ;;  %v4260_v44 = vpop.permute.xlu1 %458  ;;  %v4264_v46 = vpop.permute.xlu0 %462 }
  0x99   : > { %3524 = vmatpush3.msk.msra.mxu1 %vm376_vm2, %v359_v22 }
  0x9a   : > { %3526 = vmatmul.mubr.msk.f32.vlgmr.msra.gmra.mrb[0].mxu1 %vm369_vm0, %v4200_v23 }
  0x9b   : > { %3532 = vmatprep.mubr.msk.f32.mxu1 %vm475_vm3, %v4209_v24 }
  0x9c   : > { %v4262_v45 = vpop.permute.xlu1 %467 }
  0xa0   : > { %v4270_v52 = vpop.permute.xlu1 %472 }
  0xc5   : > { %v581_v9 = vpop.xlane.xlu0 %580 }
  0xc6   : > { %v585_v12 = vmax.f32 %v581_v9, 1e-12 }
  0xd2   : > { %v584_v8 = vpop.xlane.xlu1 %583 }
  0xd3   : > { %v586_v11 = vmax.f32 %v584_v8, 1e-12  ;;  %v4341_v8 = vld [vmem:[%s4179_s23 + $0x18] sm:$0xff] }
  0xd5   : > { %3899 = vrsqrt.f32 %v586_v11 }
  0xd6   : > { %3901 = vrsqrt.f32 %v585_v12 }
  0xdf   : > { %v3900_v13 = vpop.eup %3899 }
  0xe0   : > { %v3902_v14 = vpop.eup %3901  ;;  %v618_v16 = vmul.f32 %v3900_v13, %v4185_v7 }
  0xe1   : > { %v617_v15 = vmul.f32 %v3902_v14, %v4182_v6 }
  0xe3   : > { %v3747_v18 = vpack.c.bf16 %v618_v16, %v617_v15 }
  0xe5   : > { %3749 = vmatprep.subr.msk.bf16.mxu0 %vm4284_vm4, %v3747_v18 }
  0xe6   : > { %3752 = vmatpush3.bf16.xpose.msk.msra.mxu0 %vm4284_vm4, %v3747_v18  ;;  %v1116_v18 = vsel %vm336_vm1, %v4341_v8, 0.0 }
 0x16d   : > { %v3527_v30 = vpop.f32.mrb[0].mxu1 }
 0x16e   : > { %v452_v31 = vadd.f32 %v3527_v30, %v4229_v29  ;;  %v446_v32 = vpop.f32.mrb[1].mxu1 }
 0x16f   : > { %v447_v33 = vadd.f32 %v446_v32, %v4227_v28 }
 0x170   : > { %v456_v34 = vmax.f32 %v452_v31, 0.0 }
 0x171   : > { %v455_v35 = vmax.f32 %v447_v33, 0.0 }
 0x173   : > { %v3743_v36 = vpack.c.bf16 %v456_v34, %v455_v35 }
 0x175   : > { %3744 = vmatprep.subr.bf16.mxu1 %v3743_v36 }
 0x176   : > { %3746 = vmatpush3.bf16.msra.mxu1 %v3743_v36 }
 0x179   : > { %3533 = vmatmul.mubr.msk.f32.vlgmr.msra.gmra.mrb[2].mxu1 %vm475_vm3, %v4236_v37 }
 0x17a   : > { %3535 = vmatprep.mubr.msk.f32.mxu1 %vm475_vm3, %v4241_v38 }
 0x17d   : > { %3536 = vmatmul.mubr.msk.f32.gmra.mrb[4].mxu1 %vm475_vm3, %v4250_v39 }
 0x24c   : > { %v3534_v47 = vpop.f32.mrb[2].mxu1 }
 0x24d   : > { %v560_v48 = vadd.f32 %v3534_v47, %v4264_v46  ;;  %v554_v49 = vpop.f32.mrb[3].mxu1  ;;  %v3754_v47 = vpack.c.bf16 %v4185_v7, %v4182_v6  ;;  %v330_v6 = vld [vmem:[%s4779_s4] sm:$0xff]  ;;  %v331_v7 = vld [vmem:[%s4779_s4 + $0x8] sm:$0xff] }
 0x24e   : > { %v555_v50 = vadd.f32 %v554_v49, %v4260_v44  ;;  %v4058_v49 = vmov 0.0  }
 0x24f   : > { %v4268_v51 = vmax.f32 %v560_v48, 0.0  ;;  %v4056_v48 = vmov 0.0|0.0   ;;  %3552 = vmatprep.mubr.msk.f32.mxu1 %vm4057_vm5, %v4058_v49 }
 0x250   : > { %v573_v53 = vmax.f32 %v555_v50, 0.0  ;;  %v3537_v54 = vpop.f32.mrb[4].mxu1  ;;  %3753 = vmatprep.subr.bf16.mxu1 %v4056_v48  ;;  %3756 = vmatprep.subr.bf16.mxu0 %v4056_v48  ;;  %v4317_v50 = vpack.c.bf16 %v331_v7, %v330_v6 }
 0x251   : > { %v570_v55 = vadd.f32 %v3537_v54, %v4270_v52  ;;  %v564_v56 = vpop.f32.mrb[5].mxu1  ;;  %v590_v62 = vmul.f32 %v4268_v51, %v4268_v51  ;;  %3755 = vmatpush3.bf16.msra.mxu1 %v3754_v47 }
 0x252   : > { %v565_v57 = vadd.f32 %v564_v56, %v4262_v45  ;;  %v589_v58 = vmul.f32 %v573_v53, %v573_v53  ;;  %3764 = vmatprep.subr.bf16.mxu1 %v4056_v48 }
 0x253   : > { %v576_v59 = vmax.f32 %v570_v55, 0.0  ;;  %v596_v2 = vsel %vm336_vm1, %v590_v62, 0.0 }
 0x254   : > { %v575_v60 = vmax.f32 %v565_v57, 0.0  ;;  %v593_v61 = vsel %vm336_vm1, %v589_v58, 0.0 }
 0x255   : > { %594 = vadd.xlane.f32.xlu0 %v593_v61  ;;  %v592_v4 = vmul.f32 %v576_v59, %v576_v59 }
 0x256   : > { %v591_v63 = vmul.f32 %v575_v60, %v575_v60 }
 0x257   : > { %v602_v10 = vsel %vm336_vm1, %v592_v4, 0.0  ;;  %v4338_v4 = vld [vmem:[%s4179_s23 + $0x10] sm:$0xff] }
 0x258   : > { %v599_v1 = vsel %vm336_vm1, %v591_v63, 0.0  ;;  %v1115_v16 = vsel %vm336_vm1, %v4338_v4, 0.0 }
 0x259   : > { %600 = vadd.xlane.f32.xlu1 %v599_v1  ;;  %597 = vadd.xlane.f32.xlu0 %v596_v2 }
 0x25d   : > { %603 = vadd.xlane.f32.xlu0 %v602_v10 }
 0x26a   : > { %789 = vrot.lane.b32.xlu1 %v4154_v0, %s4054_s9  ;;  %s3391_s9 = sshll.u32 %s4124_s28, 9 }
 0x26b   : > { %s4728_s16 = scalar_lea.hbm %s4782_s7, %s3391_s9 }
 0x26e   : > { %763 = vperm.xlu1 %3898, %v4169_v5  }
 0x272   : > { %767 = vperm.xlu1 %3898, %v4218_v26  }
 0x273   : > { %759 = vperm.xlu0 %3897, %v4154_v0  }
 0x276   : > { %771 = vperm.xlu1 %3898, %v4224_v27  }
 0x2e2   : > { %v595_v22 = vpop.xlane.xlu0 %594 }
 0x2e3   : > { %v605_v25 = vmax.f32 %v595_v22, 1e-12 }
 0x2e5   : > { %3903 = vrsqrt.f32 %v605_v25 }
 0x2e6   : > { %v601_v30 = vpop.xlane.xlu1 %600  ;;  %v598_v31 = vpop.xlane.xlu0 %597 }
 0x2e7   : > { %v607_v32 = vmax.f32 %v601_v30, 1e-12  ;;  %v606_v33 = vmax.f32 %v598_v31, 1e-12 }
 0x2e9   : > { %3905 = vrsqrt.f32 %v607_v32 }
 0x2ea   : > { %3907 = vrsqrt.f32 %v606_v33  ;;  %v604_v34 = vpop.xlane.xlu0 %603  ;;  %v790_v36 = vpop.permute.xlu1 %789  ;;  %v1117_v33 = vadd.f32 %v1116_v18, %v1115_v16 }
 0x2eb   : > { %v608_v35 = vmax.f32 %v604_v34, 1e-12  ;;  %3839 = vpush %v790_v36 }
 0x2ed   : > { %3909 = vrsqrt.f32 %v608_v35 }
 0x2ef   : > { %v3904_v0 = vpop.eup %3903 }
 0x2f0   : > { %v613_v5 = vmul.f32 %v3904_v0, %v573_v53  ;;  %v333_v53 = vld [vmem:[%s4779_s4 + $0x18] sm:$0xff] }
 0x2f2   : > { %3542 = vmatprep.mubr.msk.f32.mxu0 %vm336_vm1, %v613_v5 }
 0x2f3   : > { %v3906_v26 = vpop.eup %3905 }
 0x2f4   : > { %v3908_v27 = vpop.eup %3907  ;;  %v615_v40 = vmul.f32 %v3906_v26, %v575_v60 }
 0x2f5   : > { %v614_v41 = vmul.f32 %v3908_v27, %v4268_v51  ;;  %v332_v51 = vld [vmem:[%s4779_s4 + $0x10] sm:$0xff]  ;;  %v4348_v27 = vpop.permute.xlu1 %763 }
 0x2f6   : > { %v4329_v54 = vpack.c.bf16 %v333_v53, %v332_v51 }
 0x2f7   : > { %v3910_v42 = vpop.eup %3909  ;;  %3543 = vmatmul.mubr.msk.f32.vlgmr.msra.gmra.mrb[0].mxu0 %vm336_vm1, %v614_v41 }
 0x2f8   : > { %3545 = vmatprep.mubr.msk.f32.mxu0 %vm336_vm1, %v615_v40  ;;  %v616_v43 = vmul.f32 %v3910_v42, %v576_v59  ;;  %3759 = vmatpush3.bf16.xpose.msk.msra.mxu0 %vm4284_vm4, %v4317_v50  ;;  %v1118_v42 = vrot.slane %v1117_v33, 4 }
 0x2f9   : > { %3760 = vmatprep.subr.bf16.mxu0 %v4056_v48  ;;  %v4350_v53 = vpop.permute.xlu1 %767 }
 0x2fa   : > { %v1119_v51 = vadd.f32 %v1118_v42, %v1117_v33 }
 0x2fb   : > { %3546 = vmatmul.mubr.msk.f32.gmra.mrb[2].mxu0 %vm336_vm1, %v616_v43 }
 0x2fc   : > { %3563 = vmatprep.mubr.msk.f32.mxu0 %vm4057_vm5, %v4058_v49 }
 0x300   : > { %3763 = vmatpush3.bf16.xpose.msk.msra.mxu0 %vm4284_vm4, %v4329_v54 }
 0x31c   : > { %s3840_s22 = spop %3839 }
 0x31d   : > { %v4365_v33 = vstv %s3840_s22 }
 0x3ca   : > { %v3544_v55 = vpop.f32.mrb[0].mxu0 }
 0x3cb   : > { %v729_v56 = vsel %vm475_vm3, %v3544_v55, 0.0  ;;  %v703_v57 = vpop.f32.mrb[1].mxu0 }
 0x3cc   : > { %v730_v58 = vrot.slane %v729_v56, 4  ;;  %v722_v59 = vsel %vm475_vm3, %v703_v57, 0.0 }
 0x3cd   : > { %v723_v60 = vrot.slane %v722_v59, 4 }
 0x3ce   : > { %v731_v61 = vadd.f32 %v730_v58, %v729_v56  ;;  %v3547_v62 = vpop.f32.mrb[2].mxu0  ;;  %v4352_v56 = vpop.permute.xlu0 %759  ;;  %v1120_v58 = vrot.slane %v1119_v51, 2 }
 0x3cf   : > { %v724_v63 = vadd.f32 %v723_v60, %v722_v59  ;;  %v743_v1 = vsel %vm475_vm3, %v3547_v62, 0.0  ;;  %v713_v2 = vpop.f32.mrb[3].mxu0  ;;  %v775_v59 = vmul.f32 %v3544_v55, %v4348_v27 }
 0x3d0   : > { %v732_v9 = vrot.slane %v731_v61, 2  ;;  %v744_v10 = vrot.slane %v743_v1, 4  ;;  %v736_v11 = vsel %vm475_vm3, %v713_v2, 0.0 }
 0x3d1   : > { %v725_v12 = vrot.slane %v724_v63, 2  ;;  %v737_v13 = vrot.slane %v736_v11, 4 }
 0x3d2   : > { %v733_v14 = vadd.f32 %v732_v9, %v731_v61  ;;  %v745_v15 = vadd.f32 %v744_v10, %v743_v1  ;;  %v774_v61 = vmul.f32 %v4352_v56, %v703_v57  ;;  %v4356_v9 = vpop.permute.xlu1 %771  ;;  %v1121_v10 = vadd.f32 %v1120_v58, %v1119_v51 }
 0x3d3   : > { %v726_v21 = vadd.f32 %v725_v12, %v724_v63  ;;  %v738_v22 = vadd.f32 %v737_v13, %v736_v11 }
 0x3d4   : > { %v734_v25 = vrot.slane %v733_v14, 1  ;;  %v746_v30 = vrot.slane %v745_v15, 2 }
 0x3d5   : > { %v727_v31 = vrot.slane %v726_v21, 1  ;;  %v739_v32 = vrot.slane %v738_v22, 2 }
 0x3d6   : > { %v735_v34 = vadd.f32 %v734_v25, %v733_v14  ;;  %v747_v35 = vadd.f32 %v746_v30, %v745_v15  ;;  %v777_v14 = vmul.f32 %v3547_v62, %v4356_v9  ;;  %v776_v15 = vmul.f32 %v4350_v53, %v713_v2 }
 0x3d7   : > { %v728_v36 = vadd.f32 %v727_v31, %v726_v21  ;;  %v740_v0 = vadd.f32 %v739_v32, %v738_v22  ;;  %v1122_v21 = vrot.slane %v1121_v10, 1 }
 0x3d8   : > { %v751_v5 = vadd.f32 1e-10, %v735_v34  ;;  %v748_v26 = vrot.slane %v747_v35, 1  ;;  %v3393_v34 = vld [vmem:[%s4370_s13] sm:$0xff]  }
 0x3d9   : > { %v750_v40 = vadd.f32 1e-10, %v728_v36  ;;  %v741_v41 = vrot.slane %v740_v0, 1  ;;  %v1123_v31 = vadd.f32 %v1122_v21, %v1121_v10 }
 0x3da   : > { %3911 = vrcp.f32 %v751_v5  ;;  %v749_v43 = vadd.f32 %v748_v26, %v747_v35 }
 0x3db   : > { %3913 = vrcp.f32 %v750_v40  ;;  %v742_v47 = vadd.f32 %v741_v41, %v740_v0  ;;  %v1124_v35 = vmul.f32 0.0625, %v1123_v31 }
 0x3dc   : > { %v753_v6 = vadd.f32 1e-10, %v749_v43 }
 0x3dd   : > { %v752_v7 = vadd.f32 1e-10, %v742_v47  ;;  %v1125_v36 = vmul.f32 %v1124_v35, %v4191_v17 }
 0x3de   : > { %3915 = vrcp.f32 %v753_v6 }
 0x3df   : > { %3917 = vrcp.f32 %v752_v7  ;;  %v1126_v0 = vadd.f32 %v1125_v36, %v4194_v20 }
 0x3e1   : > { %v1127_v5 = vmax.f32 %v1126_v0, 0.0 }
 0x3e4   : > { %v3912_v60 = vpop.eup %3911 }
 0x3e5   : > { %v3914_v63 = vpop.eup %3913  ;;  %v779_v1 = vmul.f32 %v3912_v60, %v775_v59 }
 0x3e6   : > { %v778_v11 = vmul.f32 %v3914_v63, %v774_v61 }
 0x3e7   : > { %v783_v12 = vsel %vm475_vm3, %v779_v1, 0.0 }
 0x3e8   : > { %v3916_v13 = vpop.eup %3915  ;;  %v782_v16 = vsel %vm475_vm3, %v778_v11, 0.0  ;;  %v1297_v11 = vmul.f32 %v4338_v4, %v4338_v4 }
 0x3e9   : > { %v3918_v55 = vpop.eup %3917  ;;  %v784_v18 = vadd.f32 %v783_v12, %v782_v16  ;;  %v781_v57 = vmul.f32 %v3916_v13, %v777_v14  ;;  %v1298_v12 = vmul.f32 %v4341_v8, %v4341_v8 }
 0x3ea   : > { %v780_v22 = vmul.f32 %v3918_v55, %v776_v15  ;;  %v1299_v13 = vsel %vm336_vm1, %v1297_v11, 0.0 }
 0x3eb   : > { %v787_v32 = vsel %vm475_vm3, %v781_v57, 0.0  ;;  %v1302_v14 = vsel %vm336_vm1, %v1298_v12, 0.0  ;;  %1300 = vadd.xlane.f32.xlu1 %v1299_v13 }
 0x3ec   : > { %v785_v25 = vsel %vm475_vm3, %v780_v22, 0.0  ;;  %1303 = vadd.xlane.f32.xlu0 %v1302_v14 }
 0x3ed   : > { %v786_v30 = vadd.f32 %v785_v25, %v784_v18 }
 0x3ef   : > { %v788_v62 = vadd.f32 %v787_v32, %v786_v30 }
 0x3f1   : > { %v794_v2 = vadd.f32 %v4365_v33, %v788_v62 }
 0x3f3   : > { %3553 = vmatmul.mubr.msk.f32.vlgmr.msra.gmra.mrb[6].mxu1 %vm475_vm3, %v794_v2 }
 0x3f4   : > { %3766 = vmatpush3.bf16.msra.mxu1 %v3393_v34  ;;  %3570 = vmatprep.mubr.msk.f32.mxu1 %vm4057_vm5, %v4058_v49 }
 0x3f5   : > { %3573 = vmatprep.subr.mxu1 %v4058_v49 }
 0x3f7   : > { %3571 = vmatmul.mubr.msk.f32.vlgmr.msra.gmra.mrb[8].mxu1 %vm475_vm3, %v794_v2 }
 0x3f8   : > { %3575 = vmatprep.mubr.msk.f32.mxu1 %vm4057_vm5, %v4058_v49 }
 0x3fd   : > { %3574 = vmatpush3.xpose.msk.msra.mxu1 %vm475_vm3, %v794_v2 }
 0x3fe   : > { %3578 = vmatprep.subr.msk.mxu1 %vm376_vm2, %v1127_v5 }
 0x4c6   : > { %v864_v26 = vpop.f32.mrb[6].mxu1 }
 0x4c7   : > { %v3554_v40 = vpop.f32.mrb[7].mxu1  ;;  %3564 = vmatmul.mubr.msk.f32.vlgmr.msra.gmra.mrb[4].mxu0 %vm336_vm1, %v864_v26 }
 0x4c8   : > { %v1301_v40 = vpop.xlane.xlu1 %1300 }
 0x4ca   : > { %v1031_v41 = vpop.f32.mrb[8].mxu1 }
 0x4cb   : > { %v3572_v42 = vpop.f32.mrb[9].mxu1  ;;  %3576 = vmatmul.mubr.msk.f32.vlgmr.msra.gmra.mrb[10].mxu1 %vm475_vm3, %v1031_v41  ;;  %v1304_v41 = vpop.xlane.xlu0 %1303 }
 0x4cc   : > { %3579 = vmatpush3.msk.msra.mxu1 %vm376_vm2, %v1127_v5  ;;  %3580 = vmatprep.mubr.msk.f32.mxu1 %vm369_vm0, %v4161_v3  ;;  %v1305_v42 = vmax.f32 %v1301_v40, 1e-12 }
 0x4ce   : > { %3919 = vrsqrt.f32 %v1305_v42  ;;  %v4455_v42 = vld [vmem:[%s4179_s23 + $0x20] sm:$0xff] }
 0x4cf   : > { %3581 = vmatmul.mubr.msk.f32.vlgmr.msra.gmra.mrb[12].mxu1 %vm369_vm0, %v4200_v23 }
 0x4d0   : > { %3587 = vmatprep.mubr.msk.f32.mxu1 %vm475_vm3, %v4209_v24 }
 0x59a   : > { %v4395_v43 = vpop.f32.mrb[4].mxu0 }
 0x59b   : > { %v3565_v47 = vpop.f32.mrb[5].mxu0 }
 0x59c   : > { %v1306_v47 = vmax.f32 %v1304_v41, 1e-12 }
 0x59e   : > { %v1104_v6 = vpop.f32.mrb[10].mxu1  ;;  %3921 = vrsqrt.f32 %v1306_v47  ;;  %v4458_v47 = vld [vmem:[%s4179_s23 + $0x28] sm:$0xff] }
 0x59f   : > { %v1108_v7 = vmax.f32 %v1104_v6, 0.0  ;;  %v3577_v51 = vpop.f32.mrb[11].mxu1 }
 0x5a1   : > { %1111 = vst.msk [vmem:[%s4399_s15] sm:$0xff] %vm1110_vm6, %v1108_v7  ;;  %v3920_v7 = vpop.eup %3919 }
 0x5a2   : > { %v3582_v58 = vpop.f32.mrb[12].mxu1 }
 0x5a3   : > { %v1203_v59 = vadd.f32 %v3582_v58, %v4229_v29  ;;  %v1197_v60 = vpop.f32.mrb[13].mxu1  ;;  %v1337_v58 = vmul.f32 %v3920_v7, %v4338_v4 }
 0x5a4   : > { %v1198_v61 = vadd.f32 %v1197_v60, %v4227_v28 }
 0x5a5   : > { %v1207_v63 = vmax.f32 %v1203_v59, 0.0 }
 0x5a6   : > { %v1206_v1 = vmax.f32 %v1198_v61, 0.0 }
 0x5a8   : > { %v3767_v10 = vpack.c.bf16 %v1207_v63, %v1206_v1  ;;  %v3922_v51 = vpop.eup %3921 }
 0x5a9   : > { %v1338_v59 = vmul.f32 %v3922_v51, %v4341_v8 }
 0x5aa   : > { %3768 = vmatprep.subr.bf16.mxu1 %v3767_v10 }
 0x5ab   : > { %3770 = vmatpush3.bf16.msra.mxu1 %v3767_v10  ;;  %v3771_v60 = vpack.c.bf16 %v1338_v59, %v1337_v58 }
 0x5ac   : > { %3777 = vmatprep.subr.bf16.mxu1 %v4056_v48 }
 0x5ad   : > { %3773 = vmatprep.subr.msk.bf16.mxu0 %vm4284_vm4, %v3771_v60 }
 0x5ae   : > { %3588 = vmatmul.mubr.msk.f32.vlgmr.msra.gmra.mrb[14].mxu1 %vm475_vm3, %v4236_v37  ;;  %3776 = vmatpush3.bf16.xpose.msk.msra.mxu0 %vm4284_vm4, %v3771_v60 }
 0x5af   : > { %3590 = vmatprep.mubr.msk.f32.mxu1 %vm475_vm3, %v4241_v38  ;;  %3780 = vmatprep.subr.bf16.mxu0 %v4056_v48 }
 0x5b2   : > { %3591 = vmatmul.mubr.msk.f32.gmra.mrb[16].mxu1 %vm475_vm3, %v4250_v39 }
 0x5b3   : > { %3607 = vmatprep.mubr.msk.f32.mxu1 %vm4057_vm5, %v4058_v49 }
 0x681   : > { %v3589_v15 = vpop.f32.mrb[14].mxu1 }
 0x682   : > { %v1280_v16 = vadd.f32 %v3589_v15, %v4264_v46  ;;  %v1274_v55 = vpop.f32.mrb[15].mxu1 }
 0x683   : > { %v1275_v18 = vadd.f32 %v1274_v55, %v4260_v44 }
 0x684   : > { %v1294_v21 = vmax.f32 %v1280_v16, 0.0 }
 0x685   : > { %v1293_v57 = vmax.f32 %v1275_v18, 0.0  ;;  %v3592_v22 = vpop.f32.mrb[16].mxu1 }
 0x686   : > { %v1284_v25 = vpop.f32.mrb[17].mxu1  ;;  %v1310_v30 = vmul.f32 %v1294_v21, %v1294_v21  ;;  %v1290_v32 = vadd.f32 %v3592_v22, %v4270_v52 }
 0x687   : > { %v1285_v31 = vadd.f32 %v1284_v25, %v4262_v45  ;;  %v1309_v2 = vmul.f32 %v1293_v57, %v1293_v57 }
 0x688   : > { %v1316_v62 = vsel %vm336_vm1, %v1310_v30, 0.0  ;;  %v1296_v35 = vmax.f32 %v1290_v32, 0.0 }
 0x689   : > { %v1295_v34 = vmax.f32 %v1285_v31, 0.0  ;;  %1317 = vadd.xlane.f32.xlu1 %v1316_v62  ;;  %v1313_v36 = vsel %vm336_vm1, %v1309_v2, 0.0 }
 0x68a   : > { %v1312_v26 = vmul.f32 %v1296_v35, %v1296_v35 }
 0x68b   : > { %v1311_v0 = vmul.f32 %v1295_v34, %v1295_v34 }
 0x68c   : > { %v1322_v6 = vsel %vm336_vm1, %v1312_v26, 0.0 }
 0x68d   : > { %1314 = vadd.xlane.f32.xlu1 %v1313_v36  ;;  %v1319_v5 = vsel %vm336_vm1, %v1311_v0, 0.0 }
 0x691   : > { %1320 = vadd.xlane.f32.xlu1 %v1319_v5 }
 0x695   : > { %1323 = vadd.xlane.f32.xlu1 %v1322_v6 }
 0x716   : > { %v1318_v61 = vpop.xlane.xlu1 %1317 }
 0x717   : > { %v1326_v63 = vmax.f32 %v1318_v61, 1e-12 }
 0x719   : > { %3923 = vrsqrt.f32 %v1326_v63  ;;  %v1794_v63 = vsel %vm336_vm1, %v4455_v42, 0.0 }
 0x71a   : > { %v1315_v1 = vpop.xlane.xlu1 %1314 }
 0x71b   : > { %v1325_v10 = vmax.f32 %v1315_v1, 1e-12  ;;  %v1795_v1 = vsel %vm336_vm1, %v4458_v47, 0.0 }
 0x71d   : > { %3925 = vrsqrt.f32 %v1325_v10 }
 0x71e   : > { %v1321_v11 = vpop.xlane.xlu1 %1320 }
 0x71f   : > { %v1327_v12 = vmax.f32 %v1321_v11, 1e-12 }
 0x721   : > { %3927 = vrsqrt.f32 %v1327_v12 }
 0x722   : > { %v1324_v13 = vpop.xlane.xlu1 %1323 }
 0x723   : > { %v1328_v14 = vmax.f32 %v1324_v13, 1e-12  ;;  %v3924_v15 = vpop.eup %3923 }
 0x724   : > { %v1334_v18 = vmul.f32 %v3924_v15, %v1294_v21  ;;  %v3778_v21 = vpack.c.bf16 %v4341_v8, %v4338_v4 }
 0x725   : > { %3929 = vrsqrt.f32 %v1328_v14 }
 0x726   : > { %3779 = vmatpush3.bf16.msra.mxu1 %v3778_v21 }
 0x727   : > { %v3926_v16 = vpop.eup %3925  ;;  %3788 = vmatprep.subr.bf16.mxu1 %v4056_v48 }
 0x728   : > { %v1333_v55 = vmul.f32 %v3926_v16, %v1293_v57  ;;  %v1796_v16 = vadd.f32 %v1795_v1, %v1794_v63 }
 0x72a   : > { %3597 = vmatprep.mubr.msk.f32.mxu0 %vm336_vm1, %v1333_v55 }
 0x72b   : > { %v3928_v22 = vpop.eup %3927  ;;  %3598 = vmatmul.mubr.msk.f32.vlgmr.msra.gmra.mrb[6].mxu0 %vm336_vm1, %v1334_v18 }
 0x72c   : > { %v1335_v25 = vmul.f32 %v3928_v22, %v1295_v34  ;;  %3783 = vmatpush3.bf16.xpose.msk.msra.mxu0 %vm4284_vm4, %v4317_v50 }
 0x72d   : > { %3784 = vmatprep.subr.bf16.mxu0 %v4056_v48 }
 0x72e   : > { %3600 = vmatprep.mubr.msk.f32.mxu0 %vm336_vm1, %v1335_v25 }
 0x72f   : > { %v3930_v30 = vpop.eup %3929 }
 0x730   : > { %v1336_v31 = vmul.f32 %v3930_v30, %v1296_v35 }
 0x732   : > { %3601 = vmatmul.mubr.msk.f32.gmra.mrb[8].mxu0 %vm336_vm1, %v1336_v31  ;;  %v1797_v31 = vrot.slane %v1796_v16, 4 }
 0x733   : > { %3618 = vmatprep.mubr.msk.f32.mxu0 %vm4057_vm5, %v4058_v49 }
 0x734   : > { %3787 = vmatpush3.bf16.xpose.msk.msra.mxu0 %vm4284_vm4, %v4329_v54 }
 0x7fe   : > { %v3599_v57 = vpop.f32.mrb[6].mxu0 }
 0x7ff   : > { %v1449_v32 = vsel %vm475_vm3, %v3599_v57, 0.0  ;;  %v1423_v62 = vpop.f32.mrb[7].mxu0 }
 0x800   : > { %v1450_v2 = vrot.slane %v1449_v32, 4  ;;  %v1442_v34 = vsel %vm475_vm3, %v1423_v62, 0.0 }
 0x801   : > { %v1443_v35 = vrot.slane %v1442_v34, 4 }
 0x802   : > { %v1451_v36 = vadd.f32 %v1450_v2, %v1449_v32 }
 0x803   : > { %v1444_v0 = vadd.f32 %v1443_v35, %v1442_v34  ;;  %v1798_v35 = vadd.f32 %v1797_v31, %v1796_v16 }
 0x804   : > { %v1452_v5 = vrot.slane %v1451_v36, 2 }
 0x805   : > { %v1445_v26 = vrot.slane %v1444_v0, 2  ;;  %v3602_v40 = vpop.f32.mrb[8].mxu0 }
 0x806   : > { %v1453_v41 = vadd.f32 %v1452_v5, %v1451_v36  ;;  %v1463_v4 = vsel %vm475_vm3, %v3602_v40, 0.0  ;;  %v1433_v8 = vpop.f32.mrb[9].mxu0  ;;  %v1479_v36 = vmul.f32 %v3599_v57, %v4348_v27  ;;  %v1478_v5 = vmul.f32 %v1423_v62, %v4352_v56 }
 0x807   : > { %v1446_v6 = vadd.f32 %v1445_v26, %v1444_v0  ;;  %v1464_v7 = vrot.slane %v1463_v4, 4  ;;  %v1456_v51 = vsel %vm475_vm3, %v1433_v8, 0.0  ;;  %v1480_v63 = vmul.f32 %v1433_v8, %v4350_v53 }
 0x808   : > { %v1454_v58 = vrot.slane %v1453_v41, 1  ;;  %v1457_v59 = vrot.slane %v1456_v51, 4 }
 0x809   : > { %v1447_v60 = vrot.slane %v1446_v6, 1  ;;  %v1465_v61 = vadd.f32 %v1464_v7, %v1463_v4 }
 0x80a   : > { %v1455_v10 = vadd.f32 %v1454_v58, %v1453_v41  ;;  %v1458_v11 = vadd.f32 %v1457_v59, %v1456_v51  ;;  %v1799_v41 = vrot.slane %v1798_v35, 2 }
 0x80b   : > { %v1448_v12 = vadd.f32 %v1447_v60, %v1446_v6  ;;  %v1466_v13 = vrot.slane %v1465_v61, 2 }
 0x80c   : > { %v1471_v14 = vadd.f32 1e-10, %v1455_v10  ;;  %v1459_v15 = vrot.slane %v1458_v11, 2  ;;  %v1800_v58 = vadd.f32 %v1799_v41, %v1798_v35 }
 0x80d   : > { %v1470_v55 = vadd.f32 1e-10, %v1448_v12  ;;  %v1467_v18 = vadd.f32 %v1466_v13, %v1465_v61  ;;  %v1481_v61 = vmul.f32 %v3602_v40, %v4356_v9 }
 0x80e   : > { %3931 = vrcp.f32 %v1471_v14  ;;  %v1460_v22 = vadd.f32 %v1459_v15, %v1458_v11  ;;  %v1801_v1 = vrot.slane %v1800_v58, 1 }
 0x80f   : > { %3933 = vrcp.f32 %v1470_v55  ;;  %v1468_v25 = vrot.slane %v1467_v18, 1  ;;  %v3408_v55 = vld [vmem:[%s4370_s13 + $0x8] sm:$0xff]  }
 0x810   : > { %v1461_v30 = vrot.slane %v1460_v22, 1  ;;  %v1802_v13 = vadd.f32 %v1801_v1, %v1800_v58 }
 0x811   : > { %v1469_v21 = vadd.f32 %v1468_v25, %v1467_v18 }
 0x812   : > { %v1462_v32 = vadd.f32 %v1461_v30, %v1460_v22  ;;  %v1803_v18 = vmul.f32 0.0625, %v1802_v13 }
 0x813   : > { %v1473_v2 = vadd.f32 1e-10, %v1469_v21 }
 0x814   : > { %v1472_v34 = vadd.f32 1e-10, %v1462_v32  ;;  %v1804_v40 = vmul.f32 %v1803_v18, %v4191_v17  ;;  %v1976_v32 = vmul.f32 %v4455_v42, %v4455_v42 }
 0x815   : > { %3935 = vrcp.f32 %v1473_v2  ;;  %v1977_v2 = vmul.f32 %v4458_v47, %v4458_v47 }
 0x816   : > { %3937 = vrcp.f32 %v1472_v34  ;;  %v1805_v8 = vadd.f32 %v1804_v40, %v4194_v20  ;;  %v1978_v34 = vsel %vm336_vm1, %v1976_v32, 0.0 }
 0x817   : > { %v1981_v35 = vsel %vm336_vm1, %v1977_v2, 0.0  ;;  %1979 = vadd.xlane.f32.xlu0 %v1978_v34 }
 0x818   : > { %v3932_v0 = vpop.eup %3931  ;;  %v1806_v22 = vmax.f32 %v1805_v8, 0.0  ;;  %1982 = vadd.xlane.f32.xlu1 %v1981_v35 }
 0x819   : > { %v3934_v26 = vpop.eup %3933  ;;  %v1483_v4 = vmul.f32 %v3932_v0, %v1479_v36 }
 0x81a   : > { %v1482_v6 = vmul.f32 %v3934_v26, %v1478_v5 }
 0x81b   : > { %v1487_v7 = vsel %vm475_vm3, %v1483_v4, 0.0 }
 0x81c   : > { %v1486_v51 = vsel %vm475_vm3, %v1482_v6, 0.0 }
 0x81d   : > { %v1488_v59 = vadd.f32 %v1487_v7, %v1486_v51 }
 0x81f   : > { %v3936_v60 = vpop.eup %3935 }
 0x820   : > { %v3938_v57 = vpop.eup %3937  ;;  %v1485_v10 = vmul.f32 %v3936_v60, %v1481_v61 }
 0x821   : > { %v1484_v62 = vmul.f32 %v3938_v57, %v1480_v63 }
 0x822   : > { %v1491_v14 = vsel %vm475_vm3, %v1485_v10, 0.0 }
 0x823   : > { %v1489_v11 = vsel %vm475_vm3, %v1484_v62, 0.0 }
 0x824   : > { %v1490_v12 = vadd.f32 %v1489_v11, %v1488_v59 }
 0x826   : > { %v1492_v15 = vadd.f32 %v1491_v14, %v1490_v12 }
 0x828   : > { %v1493_v16 = vadd.f32 %v1492_v15, %v4365_v33 }
 0x82a   : > { %3608 = vmatmul.mubr.msk.f32.vlgmr.msra.gmra.mrb[18].mxu1 %vm475_vm3, %v1493_v16 }
 0x82b   : > { %3790 = vmatpush3.bf16.msra.mxu1 %v3408_v55  ;;  %3625 = vmatprep.mubr.msk.f32.mxu1 %vm4057_vm5, %v4058_v49 }
 0x82c   : > { %3628 = vmatprep.subr.mxu1 %v4058_v49 }
 0x82e   : > { %3626 = vmatmul.mubr.msk.f32.vlgmr.msra.gmra.mrb[20].mxu1 %vm475_vm3, %v1493_v16 }
 0x82f   : > { %3630 = vmatprep.mubr.msk.f32.mxu1 %vm4057_vm5, %v4058_v49 }
 0x834   : > { %3629 = vmatpush3.xpose.msk.msra.mxu1 %vm475_vm3, %v1493_v16 }
 0x835   : > { %3633 = vmatprep.subr.msk.mxu1 %vm376_vm2, %v1806_v22 }
 0x8a4   : > { %v1980_v14 = vpop.xlane.xlu0 %1979 }
 0x8a5   : > { %v1984_v8 = vmax.f32 %v1980_v14, 1e-12  ;;  %v4551_v14 = vld [vmem:[%s4179_s23 + $0x30] sm:$0xff] }
 0x8fd   : > { %v1563_v25 = vpop.f32.mrb[18].mxu1 }
 0x8fe   : > { %v3609_v30 = vpop.f32.mrb[19].mxu1  ;;  %3619 = vmatmul.mubr.msk.f32.vlgmr.msra.gmra.mrb[10].mxu0 %vm336_vm1, %v1563_v25 }
 0x901   : > { %v1711_v31 = vpop.f32.mrb[20].mxu1 }
 0x902   : > { %v3627_v21 = vpop.f32.mrb[21].mxu1  ;;  %3631 = vmatmul.mubr.msk.f32.vlgmr.msra.gmra.mrb[22].mxu1 %vm475_vm3, %v1711_v31 }
 0x903   : > { %3634 = vmatpush3.msk.msra.mxu1 %vm376_vm2, %v1806_v22  ;;  %3635 = vmatprep.mubr.msk.f32.mxu1 %vm369_vm0, %v4161_v3 }
 0x906   : > { %3636 = vmatmul.mubr.msk.f32.vlgmr.msra.gmra.mrb[24].mxu1 %vm369_vm0, %v4200_v23 }
 0x907   : > { %3642 = vmatprep.mubr.msk.f32.mxu1 %vm475_vm3, %v4209_v24 }
 0x9d1   : > { %v4501_v36 = vpop.f32.mrb[10].mxu0 }
 0x9d2   : > { %v3620_v3 = vpop.f32.mrb[11].mxu0 }
 0x9d5   : > { %v1784_v0 = vpop.f32.mrb[22].mxu1 }
 0x9d6   : > { %v1788_v23 = vmax.f32 %v1784_v0, 0.0  ;;  %v3632_v5 = vpop.f32.mrb[23].mxu1 }
 0x9d8   : > { %1790 = vst.msk [vmem:[%s4399_s15 + $0x8] sm:$0xff] %vm1110_vm6, %v1788_v23 }
 0x9d9   : > { %v3637_v24 = vpop.f32.mrb[24].mxu1 }
 0x9da   : > { %v1882_v26 = vadd.f32 %v3637_v24, %v4229_v29  ;;  %v1876_v41 = vpop.f32.mrb[25].mxu1 }
 0x9db   : > { %v1877_v4 = vadd.f32 %v1876_v41, %v4227_v28 }
 0x9dc   : > { %v1886_v6 = vmax.f32 %v1882_v26, 0.0 }
 0x9dd   : > { %v1885_v7 = vmax.f32 %v1877_v4, 0.0 }
 0x9df   : > { %v3791_v51 = vpack.c.bf16 %v1886_v6, %v1885_v7 }
 0x9e1   : > { %3792 = vmatprep.subr.bf16.mxu1 %v3791_v51 }
 0x9e2   : > { %3794 = vmatpush3.bf16.msra.mxu1 %v3791_v51 }
 0x9e3   : > { %3801 = vmatprep.subr.bf16.mxu1 %v4056_v48 }
 0x9e5   : > { %3643 = vmatmul.mubr.msk.f32.vlgmr.msra.gmra.mrb[26].mxu1 %vm475_vm3, %v4236_v37 }
 0x9e6   : > { %3645 = vmatprep.mubr.msk.f32.mxu1 %vm475_vm3, %v4241_v38 }
 0x9e9   : > { %3646 = vmatmul.mubr.msk.f32.gmra.mrb[28].mxu1 %vm475_vm3, %v4250_v39  ;;  %v1983_v39 = vpop.xlane.xlu1 %1982 }
 0x9ea   : > { %3662 = vmatprep.mubr.msk.f32.mxu1 %vm4057_vm5, %v4058_v49  ;;  %v1985_v18 = vmax.f32 %v1983_v39, 1e-12 }
 0x9ec   : > { %3939 = vrsqrt.f32 %v1985_v18 }
 0x9ed   : > { %3941 = vrsqrt.f32 %v1984_v8 }
 0x9f6   : > { %v3940_v30 = vpop.eup %3939 }
 0x9f7   : > { %v3942_v31 = vpop.eup %3941  ;;  %v2017_v32 = vmul.f32 %v3940_v30, %v4458_v47 }
 0x9f8   : > { %v2016_v21 = vmul.f32 %v3942_v31, %v4455_v42 }
 0x9fa   : > { %v3795_v2 = vpack.c.bf16 %v2017_v32, %v2016_v21 }
 0x9fc   : > { %3797 = vmatprep.subr.msk.bf16.mxu0 %vm4284_vm4, %v3795_v2 }
 0x9fd   : > { %3800 = vmatpush3.bf16.xpose.msk.msra.mxu0 %vm4284_vm4, %v3795_v2 }
 0x9fe   : > { %3804 = vmatprep.subr.bf16.mxu0 %v4056_v48 }
 0xab8   : > { %v3644_v58 = vpop.f32.mrb[26].mxu1 }
 0xab9   : > { %v1959_v59 = vadd.f32 %v3644_v58, %v4264_v46  ;;  %v1953_v60 = vpop.f32.mrb[27].mxu1 }
 0xaba   : > { %v1954_v61 = vadd.f32 %v1953_v60, %v4260_v44 }
 0xabb   : > { %v1973_v63 = vmax.f32 %v1959_v59, 0.0 }
 0xabc   : > { %v1972_v57 = vmax.f32 %v1954_v61, 0.0  ;;  %v3647_v1 = vpop.f32.mrb[28].mxu1  ;;  %v3802_v61 = vpack.c.bf16 %v4458_v47, %v4455_v42  ;;  %v4554_v42 = vld [vmem:[%s4179_s23 + $0x38] sm:$0xff] }
 0xabd   : > { %v1969_v37 = vadd.f32 %v3647_v1, %v4270_v52  ;;  %v1963_v10 = vpop.f32.mrb[29].mxu1  ;;  %v1989_v62 = vmul.f32 %v1973_v63, %v1973_v63 }
 0xabe   : > { %v1964_v38 = vadd.f32 %v1963_v10, %v4262_v45  ;;  %v1988_v11 = vmul.f32 %v1972_v57, %v1972_v57  ;;  %3803 = vmatpush3.bf16.msra.mxu1 %v3802_v61 }
 0xabf   : > { %v1975_v12 = vmax.f32 %v1969_v37, 0.0  ;;  %v1995_v13 = vsel %vm336_vm1, %v1989_v62, 0.0  ;;  %3812 = vmatprep.subr.bf16.mxu1 %v4056_v48 }
 0xac0   : > { %v1974_v15 = vmax.f32 %v1964_v38, 0.0  ;;  %1996 = vadd.xlane.f32.xlu1 %v1995_v13  ;;  %v1992_v16 = vsel %vm336_vm1, %v1988_v11, 0.0 }
 0xac1   : > { %1993 = vadd.xlane.f32.xlu0 %v1992_v16  ;;  %v1991_v55 = vmul.f32 %v1975_v12, %v1975_v12 }
 0xac2   : > { %v1990_v40 = vmul.f32 %v1974_v15, %v1974_v15 }
 0xac3   : > { %v2001_v22 = vsel %vm336_vm1, %v1991_v55, 0.0 }
 0xac4   : > { %2002 = vadd.xlane.f32.xlu1 %v2001_v22  ;;  %v1998_v25 = vsel %vm336_vm1, %v1990_v40, 0.0  ;;  %v2473_v22 = vsel %vm336_vm1, %v4551_v14, 0.0 }
 0xac5   : > { %1999 = vadd.xlane.f32.xlu0 %v1998_v25  ;;  %v2474_v25 = vsel %vm336_vm1, %v4554_v42, 0.0 }
 0xb4d   : > { %v1997_v34 = vpop.xlane.xlu1 %1996 }
 0xb4e   : > { %v2005_v35 = vmax.f32 %v1997_v34, 1e-12  ;;  %v1994_v3 = vpop.xlane.xlu0 %1993 }
 0xb4f   : > { %v2004_v0 = vmax.f32 %v1994_v3, 1e-12 }
 0xb50   : > { %3943 = vrsqrt.f32 %v2005_v35  ;;  %v2475_v35 = vadd.f32 %v2474_v25, %v2473_v22 }
 0xb51   : > { %3945 = vrsqrt.f32 %v2004_v0  ;;  %v2003_v23 = vpop.xlane.xlu1 %2002 }
 0xb52   : > { %v2007_v5 = vmax.f32 %v2003_v23, 1e-12  ;;  %v2000_v24 = vpop.xlane.xlu0 %1999 }
 0xb53   : > { %v2006_v26 = vmax.f32 %v2000_v24, 1e-12 }
 0xb54   : > { %3947 = vrsqrt.f32 %v2007_v5 }
 0xb55   : > { %3949 = vrsqrt.f32 %v2006_v26 }
 0xb5a   : > { %v3944_v41 = vpop.eup %3943 }
 0xb5b   : > { %v3946_v4 = vpop.eup %3945  ;;  %v2013_v7 = vmul.f32 %v3944_v41, %v1973_v63 }
 0xb5c   : > { %v2012_v6 = vmul.f32 %v3946_v4, %v1972_v57 }
 0xb5e   : > { %v3948_v51 = vpop.eup %3947  ;;  %3652 = vmatprep.mubr.msk.f32.mxu0 %vm336_vm1, %v2012_v6  ;;  %v2476_v6 = vrot.slane %v2475_v35, 4 }
 0xb5f   : > { %v3950_v58 = vpop.eup %3949  ;;  %3653 = vmatmul.mubr.msk.f32.vlgmr.msra.gmra.mrb[12].mxu0 %vm336_vm1, %v2013_v7  ;;  %v2015_v60 = vmul.f32 %v3948_v51, %v1975_v12 }
 0xb60   : > { %v2014_v59 = vmul.f32 %v3950_v58, %v1974_v15  ;;  %3807 = vmatpush3.bf16.xpose.msk.msra.mxu0 %vm4284_vm4, %v4317_v50 }
 0xb61   : > { %3808 = vmatprep.subr.bf16.mxu0 %v4056_v48 }
 0xb62   : > { %3655 = vmatprep.mubr.msk.f32.mxu0 %vm336_vm1, %v2014_v59 }
 0xb63   : > { %3656 = vmatmul.mubr.msk.f32.gmra.mrb[14].mxu0 %vm336_vm1, %v2015_v60  ;;  %v2477_v60 = vadd.f32 %v2476_v6, %v2475_v35 }
 0xb64   : > { %3673 = vmatprep.mubr.msk.f32.mxu0 %vm4057_vm5, %v4058_v49 }
 0xb65   : > { %v2478_v61 = vrot.slane %v2477_v60, 2 }
 0xb68   : > { %3811 = vmatpush3.bf16.xpose.msk.msra.mxu0 %vm4284_vm4, %v4329_v54 }
 0xc32   : > { %v3654_v63 = vpop.f32.mrb[12].mxu0 }
 0xc33   : > { %v2128_v57 = vsel %vm475_vm3, %v3654_v63, 0.0  ;;  %v2102_v1 = vpop.f32.mrb[13].mxu0 }
 0xc34   : > { %v2129_v37 = vrot.slane %v2128_v57, 4  ;;  %v2121_v10 = vsel %vm475_vm3, %v2102_v1, 0.0 }
 0xc35   : > { %v2122_v62 = vrot.slane %v2121_v10, 4 }
 0xc36   : > { %v2130_v38 = vadd.f32 %v2129_v37, %v2128_v57  ;;  %v3657_v11 = vpop.f32.mrb[14].mxu0  ;;  %v2158_v57 = vmul.f32 %v3654_v63, %v4348_v27 }
 0xc37   : > { %v2123_v39 = vadd.f32 %v2122_v62, %v2121_v10  ;;  %v2142_v12 = vsel %vm475_vm3, %v3657_v11, 0.0  ;;  %v2112_v13 = vpop.f32.mrb[15].mxu0  ;;  %v2157_v10 = vmul.f32 %v2102_v1, %v4352_v56 }
 0xc38   : > { %v2131_v47 = vrot.slane %v2130_v38, 2  ;;  %v2143_v15 = vrot.slane %v2142_v12, 4  ;;  %v2135_v16 = vsel %vm475_vm3, %v2112_v13, 0.0 }
 0xc39   : > { %v2124_v55 = vrot.slane %v2123_v39, 2  ;;  %v2136_v18 = vrot.slane %v2135_v16, 4 }
 0xc3a   : > { %v2132_v40 = vadd.f32 %v2131_v47, %v2130_v38  ;;  %v2144_v8 = vadd.f32 %v2143_v15, %v2142_v12 }
 0xc3b   : > { %v2125_v30 = vadd.f32 %v2124_v55, %v2123_v39  ;;  %v2137_v31 = vadd.f32 %v2136_v18, %v2135_v16  ;;  %v2479_v39 = vadd.f32 %v2478_v61, %v2477_v60  ;;  %v2160_v55 = vmul.f32 %v3657_v11, %v4356_v9 }
 0xc3c   : > { %v2133_v21 = vrot.slane %v2132_v40, 1  ;;  %v2145_v32 = vrot.slane %v2144_v8, 2  ;;  %v2159_v18 = vmul.f32 %v2112_v13, %v4350_v53 }
 0xc3d   : > { %v2126_v2 = vrot.slane %v2125_v30, 1  ;;  %v2138_v34 = vrot.slane %v2137_v31, 2  ;;  %v2480_v63 = vrot.slane %v2479_v39, 1 }
 0xc3e   : > { %v2134_v3 = vadd.f32 %v2133_v21, %v2132_v40  ;;  %v2146_v0 = vadd.f32 %v2145_v32, %v2144_v8 }
 0xc3f   : > { %v2127_v23 = vadd.f32 %v2126_v2, %v2125_v30  ;;  %v2139_v5 = vadd.f32 %v2138_v34, %v2137_v31  ;;  %v2481_v31 = vadd.f32 %v2480_v63, %v2479_v39  ;;  %v3409_v34 = vld [vmem:[%s4370_s13 + $0x10] sm:$0xff]  }
 0xc40   : > { %v2150_v24 = vadd.f32 1e-10, %v2134_v3  ;;  %v2147_v26 = vrot.slane %v2146_v0, 1 }
 0xc41   : > { %v2149_v41 = vadd.f32 1e-10, %v2127_v23  ;;  %v2140_v4 = vrot.slane %v2139_v5, 1  ;;  %v2482_v35 = vmul.f32 0.0625, %v2481_v31 }
 0xc42   : > { %3951 = vrcp.f32 %v2150_v24  ;;  %v2148_v7 = vadd.f32 %v2147_v26, %v2146_v0  ;;  %v3981_v26 = vld [vmem:[%s4778_s3] sm:$0xff] }
 0xc43   : > { %3953 = vrcp.f32 %v2149_v41  ;;  %v2141_v51 = vadd.f32 %v2140_v4, %v2139_v5  ;;  %v2483_v11 = vmul.f32 %v2482_v35, %v4191_v17  ;;  %v3979_v17 = vld [vmem:[%s4777_s2] sm:$0xff]  ;;  %v2656_v41 = vmul.f32 %v4554_v42, %v4554_v42 }
 0xc44   : > { %v2152_v58 = vadd.f32 1e-10, %v2148_v7  ;;  %v2655_v4 = vmul.f32 %v4551_v14, %v4551_v14 }
 0xc45   : > { %v2151_v59 = vadd.f32 1e-10, %v2141_v51  ;;  %v2484_v13 = vadd.f32 %v2483_v11, %v4194_v20  ;;  %v3980_v20 = vld [vmem:[%s4777_s2 + $0x8] sm:$0xff]  ;;  %v2660_v6 = vsel %vm336_vm1, %v2656_v41, 0.0 }
 0xc46   : > { %3955 = vrcp.f32 %v2152_v58  ;;  %v2657_v7 = vsel %vm336_vm1, %v2655_v4, 0.0  ;;  %2661 = vadd.xlane.f32.xlu1 %v2660_v6  ;;  %v3985_v4 = vld [vmem:[%s4780_s5] sm:$0xff] }
 0xc47   : > { %3957 = vrcp.f32 %v2151_v59  ;;  %v2485_v3 = vmax.f32 %v2484_v13, 0.0  ;;  %2658 = vadd.xlane.f32.xlu0 %v2657_v7 }
 0xc4c   : > { %v3952_v37 = vpop.eup %3951 }
 0xc4d   : > { %v3954_v62 = vpop.eup %3953  ;;  %v2162_v38 = vmul.f32 %v3952_v37, %v2158_v57 }
 0xc4e   : > { %v2161_v12 = vmul.f32 %v3954_v62, %v2157_v10 }
 0xc4f   : > { %v2166_v47 = vsel %vm475_vm3, %v2162_v38, 0.0 }
 0xc50   : > { %v3956_v15 = vpop.eup %3955  ;;  %v2165_v16 = vsel %vm475_vm3, %v2161_v12, 0.0 }
 0xc51   : > { %v3958_v40 = vpop.eup %3957  ;;  %v2167_v8 = vadd.f32 %v2166_v47, %v2165_v16  ;;  %v2164_v22 = vmul.f32 %v3956_v15, %v2160_v55  ;;  %v3982_v47 = vld [vmem:[%s4778_s3 + $0x8] sm:$0xff] }
 0xc52   : > { %v2163_v25 = vmul.f32 %v3958_v40, %v2159_v18 }
 0xc53   : > { %v2170_v21 = vsel %vm475_vm3, %v2164_v22, 0.0 }
 0xc54   : > { %v2168_v1 = vsel %vm475_vm3, %v2163_v25, 0.0 }
 0xc55   : > { %v2169_v30 = vadd.f32 %v2168_v1, %v2167_v8 }
 0xc57   : > { %v2171_v32 = vadd.f32 %v2170_v21, %v2169_v30 }
 0xc59   : > { %v2172_v2 = vadd.f32 %v2171_v32, %v4365_v33 }
 0xc5b   : > { %3663 = vmatmul.mubr.msk.f32.vlgmr.msra.gmra.mrb[30].mxu1 %vm475_vm3, %v2172_v2 }
 0xc5c   : > { %3814 = vmatpush3.bf16.msra.mxu1 %v3409_v34  ;;  %3680 = vmatprep.mubr.msk.f32.mxu1 %vm4057_vm5, %v4058_v49 }
 0xc5d   : > { %3683 = vmatprep.subr.mxu1 %v4058_v49 }
 0xc5f   : > { %3681 = vmatmul.mubr.msk.f32.vlgmr.msra.gmra.mrb[32].mxu1 %vm475_vm3, %v2172_v2 }
 0xc60   : > { %3685 = vmatprep.mubr.msk.f32.mxu1 %vm4057_vm5, %v4058_v49 }
 0xc65   : > { %3684 = vmatpush3.xpose.msk.msra.mxu1 %vm475_vm3, %v2172_v2 }
 0xc66   : > { %3688 = vmatprep.subr.msk.mxu1 %vm376_vm2, %v2485_v3 }
 0xcd4   : > { %v2659_v32 = vpop.xlane.xlu0 %2658 }
 0xd2e   : > { %v2242_v0 = vpop.f32.mrb[30].mxu1 }
 0xd2f   : > { %v3664_v23 = vpop.f32.mrb[31].mxu1  ;;  %3674 = vmatmul.mubr.msk.f32.vlgmr.msra.gmra.mrb[16].mxu0 %vm336_vm1, %v2242_v0  ;;  %v868_v0 = vlaneseq }
 0xd32   : > { %v2390_v5 = vpop.f32.mrb[32].mxu1 }
 0xd33   : > { %v3682_v24 = vpop.f32.mrb[33].mxu1  ;;  %3686 = vmatmul.mubr.msk.f32.vlgmr.msra.gmra.mrb[34].mxu1 %vm475_vm3, %v2390_v5  ;;  %v869_v5 = vshrl.u32 %v868_v0, 7 }
 0xd34   : > { %3689 = vmatpush3.msk.msra.mxu1 %vm376_vm2, %v2485_v3  ;;  %3690 = vmatprep.mubr.msk.f32.mxu1 %vm369_vm0, %v3979_v17 }
 0xd35   : > { %v870_v17 = vsub.s32 0, %v869_v5 }
 0xd37   : > { %3691 = vmatmul.mubr.msk.f32.vlgmr.msra.gmra.mrb[36].mxu1 %vm369_vm0, %v3980_v20  ;;  %v871_v6 = vrot.slane %v3985_v4, %v870_v17 }
 0xd38   : > { %3697 = vmatprep.mubr.msk.f32.mxu1 %vm475_vm3, %v3981_v26 }
 0xe02   : > { %v4603_v51 = vpop.f32.mrb[16].mxu0 }
 0xe03   : > { %v3675_v58 = vpop.f32.mrb[17].mxu0 }
 0xe06   : > { %v2463_v59 = vpop.f32.mrb[34].mxu1 }
 0xe07   : > { %v2467_v60 = vmax.f32 %v2463_v59, 0.0  ;;  %v3687_v61 = vpop.f32.mrb[35].mxu1 }
 0xe09   : > { %2469 = vst.msk [vmem:[%s4399_s15 + $0x10] sm:$0xff] %vm1110_vm6, %v2467_v60 }
 0xe0a   : > { %v3692_v57 = vpop.f32.mrb[36].mxu1 }
 0xe0b   : > { %v2561_v37 = vadd.f32 %v3692_v57, %v4229_v29  ;;  %v2555_v10 = vpop.f32.mrb[37].mxu1  ;;  %v3983_v29 = vld [vmem:[%s4778_s3 + $0x10] sm:$0xff] }
 0xe0c   : > { %v2556_v62 = vadd.f32 %v2555_v10, %v4227_v28  ;;  %v3984_v28 = vld [vmem:[%s4778_s3 + $0x18] sm:$0xff] }
 0xe0d   : > { %v2565_v38 = vmax.f32 %v2561_v37, 0.0 }
 0xe0e   : > { %v2564_v39 = vmax.f32 %v2556_v62, 0.0 }
 0xe10   : > { %v3815_v12 = vpack.c.bf16 %v2565_v38, %v2564_v39 }
 0xe12   : > { %3816 = vmatprep.subr.bf16.mxu1 %v3815_v12 }
 0xe13   : > { %3818 = vmatpush3.bf16.msra.mxu1 %v3815_v12 }
 0xe14   : > { %3825 = vmatprep.subr.bf16.mxu1 %v4056_v48 }
 0xe16   : > { %3698 = vmatmul.mubr.msk.f32.vlgmr.msra.gmra.mrb[38].mxu1 %vm475_vm3, %v3982_v47 }
 0xe17   : > { %3700 = vmatprep.mubr.msk.f32.mxu1 %vm475_vm3, %v3983_v29 }
 0xe1a   : > { %3701 = vmatmul.mubr.msk.f32.gmra.mrb[40].mxu1 %vm475_vm3, %v3984_v28 }
 0xe1b   : > { %3717 = vmatprep.mubr.msk.f32.mxu1 %vm4057_vm5, %v4058_v49 }
 0xee9   : > { %v3699_v15 = vpop.f32.mrb[38].mxu1 }
 0xeea   : > { %v2638_v16 = vadd.f32 %v3699_v15, %v4264_v46  ;;  %v2632_v55 = vpop.f32.mrb[39].mxu1  ;;  %v2662_v46 = vpop.xlane.xlu1 %2661 }
 0xeeb   : > { %v2633_v18 = vadd.f32 %v2632_v55, %v4260_v44  ;;  %v2664_v35 = vmax.f32 %v2662_v46, 1e-12  ;;  %v3826_v55 = vpack.c.bf16 %v4554_v42, %v4551_v14 }
 0xeec   : > { %v4626_v40 = vmax.f32 %v2638_v16, 0.0 }
 0xeed   : > { %v4628_v8 = vmax.f32 %v2633_v18, 0.0  ;;  %v3702_v63 = vpop.f32.mrb[40].mxu1  ;;  %3959 = vrsqrt.f32 %v2664_v35  ;;  %3827 = vmatpush3.bf16.msra.mxu1 %v3826_v55 }
 0xeee   : > { %v2648_v22 = vadd.f32 %v3702_v63, %v4270_v52  ;;  %v2642_v25 = vpop.f32.mrb[41].mxu1  ;;  %v2668_v1 = vmul.f32 %v4626_v40, %v4626_v40  ;;  %3836 = vmatprep.subr.bf16.mxu1 %v4056_v48 }
 0xeef   : > { %v2643_v30 = vadd.f32 %v2642_v25, %v4262_v45  ;;  %v2667_v31 = vmul.f32 %v4628_v8, %v4628_v8  ;;  %v2663_v45 = vmax.f32 %v2659_v32, 1e-12 }
 0xef0   : > { %v4636_v21 = vmax.f32 %v2648_v22, 0.0  ;;  %v2674_v44 = vsel %vm336_vm1, %v2668_v1, 0.0 }
 0xef1   : > { %v2653_v2 = vmax.f32 %v2643_v30, 0.0  ;;  %2675 = vadd.xlane.f32.xlu1 %v2674_v44  ;;  %v2671_v34 = vsel %vm336_vm1, %v2667_v31, 0.0  ;;  %3961 = vrsqrt.f32 %v2663_v45 }
 0xef2   : > { %2672 = vadd.xlane.f32.xlu0 %v2671_v34  ;;  %v2670_v52 = vmul.f32 %v4636_v21, %v4636_v21 }
 0xef3   : > { %v2669_v11 = vmul.f32 %v2653_v2, %v2653_v2 }
 0xef4   : > { %v2680_v13 = vsel %vm336_vm1, %v2670_v52, 0.0 }
 0xef5   : > { %2681 = vadd.xlane.f32.xlu1 %v2680_v13  ;;  %v2677_v3 = vsel %vm336_vm1, %v2669_v11, 0.0 }
 0xef6   : > { %2678 = vadd.xlane.f32.xlu0 %v2677_v3 }
 0xef7   : > { %v3960_v23 = vpop.eup %3959 }
 0xef8   : > { %v2696_v26 = vmul.f32 %v3960_v23, %v4554_v42 }
 0xefb   : > { %v3962_v24 = vpop.eup %3961 }
 0xefc   : > { %v2695_v20 = vmul.f32 %v3962_v24, %v4551_v14 }
 0xefe   : > { %v3819_v41 = vpack.c.bf16 %v2696_v26, %v2695_v20 }
 0xf00   : > { %3821 = vmatprep.subr.msk.bf16.mxu0 %vm4284_vm4, %v3819_v41 }
 0xf01   : > { %3824 = vmatpush3.bf16.xpose.msk.msra.mxu0 %vm4284_vm4, %v3819_v41 }
 0xf02   : > { %3828 = vmatprep.subr.bf16.mxu0 %v4056_v48 }
 0xf0c   : > { %873 = vrot.lane.b32.xlu0 %v871_v6, %s4059_s18  ;;  %s4060_s18 = smov [#allocation2]  }
 0xf0d   : > { %s3990_s20 = sshll.u32 %s4060_s18, 4  ;;  %s3991_s20 = int_to_ptr.vmem [resolvable:$false] %s3990_s20 }
 0xf0e   : > { %s3992_s21 = scalar_lea.vmem %s3991_s20, 1024 }
 0xf7e   : > { %v2676_v7 = vpop.xlane.xlu1 %2675 }
 0xf7f   : > { %v2684_v58 = vmax.f32 %v2676_v7, 1e-12  ;;  %v2673_v59 = vpop.xlane.xlu0 %2672 }
 0xf80   : > { %v2683_v60 = vmax.f32 %v2673_v59, 1e-12 }
 0xf81   : > { %3963 = vrsqrt.f32 %v2684_v58 }
 0xf82   : > { %3965 = vrsqrt.f32 %v2683_v60  ;;  %v2682_v61 = vpop.xlane.xlu1 %2681 }
 0xf83   : > { %v2686_v57 = vmax.f32 %v2682_v61, 1e-12  ;;  %v2679_v37 = vpop.xlane.xlu0 %2678 }
 0xf84   : > { %v2685_v10 = vmax.f32 %v2679_v37, 1e-12 }
 0xf85   : > { %3967 = vrsqrt.f32 %v2686_v57 }
 0xf86   : > { %3969 = vrsqrt.f32 %v2685_v10 }
 0xf87   : > { %v4661_v62 = vpop.permute.xlu0 %873 }
 0xf88   : > { %v958_v38 = vadd.f32 %v4395_v43, %v4661_v62  ;;  %v1637_v39 = vadd.f32 %v4501_v36, %v4661_v62  ;;  %v2316_v12 = vadd.f32 %v4603_v51, %v4661_v62 }
 0xf8a   : > { %1109 = vst.msk [vmem:[%s4659_s8] sm:$0xff] %vm336_vm1, %v958_v38  ;;  %1789 = vst.msk [vmem:[%s4659_s8 + $0x8] sm:$0xff] %vm336_vm1, %v1637_v39 }
 0xf8b   : > { %2468 = vst.msk [vmem:[%s4659_s8 + $0x10] sm:$0xff] %vm336_vm1, %v2316_v12  ;;  %v3964_v47 = vpop.eup %3963 }
 0xf8c   : > { %v3966_v29 = vpop.eup %3965  ;;  %v2692_v15 = vmul.f32 %v3964_v47, %v4626_v40 }
 0xf8d   : > { %v2691_v28 = vmul.f32 %v3966_v29, %v4628_v8 }
 0xf8f   : > { %v3968_v16 = vpop.eup %3967  ;;  %3707 = vmatprep.mubr.msk.f32.mxu0 %vm336_vm1, %v2691_v28 }
 0xf90   : > { %v3970_v43 = vpop.eup %3969  ;;  %3708 = vmatmul.mubr.msk.f32.vlgmr.msra.gmra.mrb[18].mxu0 %vm336_vm1, %v2692_v15  ;;  %v2694_v51 = vmul.f32 %v3968_v16, %v4636_v21 }
 0xf91   : > { %v2693_v36 = vmul.f32 %v3970_v43, %v2653_v2  ;;  %3831 = vmatpush3.bf16.xpose.msk.msra.mxu0 %vm4284_vm4, %v4317_v50 }
 0xf92   : > { %3832 = vmatprep.subr.bf16.mxu0 %v4056_v48 }
 0xf93   : > { %3710 = vmatprep.mubr.msk.f32.mxu0 %vm336_vm1, %v2693_v36  ;;  %v3410_v36 = vld [vmem:[%s4370_s13 + $0x18] sm:$0xff]   ;;  %s3171_s13 = sshll.u32 %s4399_s15, 4  ;;  %s4723_s13 = int_to_ptr.vmem [resolvable:$true] %s3171_s13 }
 0xf94   : > { %3711 = vmatmul.mubr.msk.f32.gmra.mrb[20].mxu0 %vm336_vm1, %v2694_v51  ;;  %s3986_s28 = scalar_lea.vmem %s4723_s13, 512  ;;  %p3993_p1 = scmp.lt.s32.totalorder %s4723_s13, %s3991_s20 }
 0xf95   : > { %3728 = vmatprep.mubr.msk.f32.mxu0 %vm4057_vm5, %v4058_v49  ;;  %p3987_p12 = scmp.ne.s32.totalorder %s4723_s13, %s3986_s28  ;;  %p3994_p2 = scmp.lt.s32.totalorder %s3992_s21, %s3986_s28 }
 0xf97   : > { %p3988_p13 = pnand %p3987_p12, %p4141_p5  ;;  %p3995_p3 = por %p3994_p2, %p3993_p1 }
 0xf99   : > { %3835 = vmatpush3.bf16.xpose.msk.msra.mxu0 %vm4284_vm4, %v4329_v54  ;;  %p3989_p0 = pneg %p3988_p13 }
 0xf9b   : > { %p3996_p4 = pnand %p3995_p3, %p3989_p0 }
0x1063   : > { %v3709_v50 = vpop.f32.mrb[18].mxu0 }
0x1064   : > { %v2807_v18 = vsel %vm475_vm3, %v3709_v50, 0.0  ;;  %v2781_v40 = vpop.f32.mrb[19].mxu0  ;;  %v2837_v6 = vmul.f32 %v3709_v50, %v4348_v27 }
0x1065   : > { %v2808_v8 = vrot.slane %v2807_v18, 4  ;;  %v2800_v63 = vsel %vm475_vm3, %v2781_v40, 0.0  ;;  %v2836_v58 = vmul.f32 %v2781_v40, %v4352_v56 }
0x1066   : > { %v2801_v22 = vrot.slane %v2800_v63, 4 }
0x1067   : > { %v2809_v25 = vadd.f32 %v2808_v8, %v2807_v18  ;;  %v3712_v1 = vpop.f32.mrb[20].mxu0 }
0x1068   : > { %v2802_v30 = vadd.f32 %v2801_v22, %v2800_v63  ;;  %v2821_v19 = vsel %vm475_vm3, %v3712_v1, 0.0  ;;  %v2791_v54 = vpop.f32.mrb[21].mxu0  ;;  %v2839_v38 = vmul.f32 %v3712_v1, %v4356_v9 }
0x1069   : > { %v2810_v31 = vrot.slane %v2809_v25, 2  ;;  %v2822_v46 = vrot.slane %v2821_v19, 4  ;;  %v2814_v14 = vsel %vm475_vm3, %v2791_v54, 0.0  ;;  %v2838_v39 = vmul.f32 %v2791_v54, %v4350_v53 }
0x106a   : > { %v2803_v42 = vrot.slane %v2802_v30, 2  ;;  %v2815_v48 = vrot.slane %v2814_v14, 4 }
0x106b   : > { %v2811_v21 = vadd.f32 %v2810_v31, %v2809_v25  ;;  %v2823_v44 = vadd.f32 %v2822_v46, %v2821_v19 }
0x106c   : > { %v2804_v32 = vadd.f32 %v2803_v42, %v2802_v30  ;;  %v2816_v2 = vadd.f32 %v2815_v48, %v2814_v14 }
0x106d   : > { %v2812_v34 = vrot.slane %v2811_v21, 1  ;;  %v2824_v52 = vrot.slane %v2823_v44, 2 }
0x106e   : > { %v2805_v35 = vrot.slane %v2804_v32, 1  ;;  %v2817_v11 = vrot.slane %v2816_v2, 2 }
0x106f   : > { %v2813_v45 = vadd.f32 %v2812_v34, %v2811_v21  ;;  %v2825_v13 = vadd.f32 %v2824_v52, %v2823_v44 }
0x1070   : > { %v2806_v3 = vadd.f32 %v2805_v35, %v2804_v32  ;;  %v2818_v0 = vadd.f32 %v2817_v11, %v2816_v2 }
0x1071   : > { %v2829_v23 = vadd.f32 1e-10, %v2813_v45  ;;  %v2826_v5 = vrot.slane %v2825_v13, 1 }
0x1072   : > { %v2828_v24 = vadd.f32 1e-10, %v2806_v3  ;;  %v2819_v17 = vrot.slane %v2818_v0, 1 }
0x1073   : > { %3971 = vrcp.f32 %v2829_v23  ;;  %v2827_v20 = vadd.f32 %v2826_v5, %v2825_v13 }
0x1074   : > { %3973 = vrcp.f32 %v2828_v24  ;;  %v2820_v26 = vadd.f32 %v2819_v17, %v2818_v0 }
0x1075   : > { %v2831_v41 = vadd.f32 1e-10, %v2827_v20 }
0x1076   : > { %v2830_v4 = vadd.f32 1e-10, %v2820_v26 }
0x1077   : > { %3975 = vrcp.f32 %v2831_v41 }
0x1078   : > { %3977 = vrcp.f32 %v2830_v4 }
0x107d   : > { %v3972_v7 = vpop.eup %3971 }
0x107e   : > { %v3974_v59 = vpop.eup %3973  ;;  %v2841_v60 = vmul.f32 %v3972_v7, %v2837_v6 }
0x107f   : > { %v2840_v61 = vmul.f32 %v3974_v59, %v2836_v58 }
0x1080   : > { %v2845_v57 = vsel %vm475_vm3, %v2841_v60, 0.0 }
0x1081   : > { %v3976_v37 = vpop.eup %3975  ;;  %v2844_v10 = vsel %vm475_vm3, %v2840_v61, 0.0 }
0x1082   : > { %v3978_v12 = vpop.eup %3977  ;;  %v2846_v47 = vadd.f32 %v2845_v57, %v2844_v10  ;;  %v2843_v29 = vmul.f32 %v3976_v37, %v2839_v38 }
0x1083   : > { %v2842_v27 = vmul.f32 %v3978_v12, %v2838_v39 }
0x1084   : > { %v2849_v15 = vsel %vm475_vm3, %v2843_v29, 0.0 }
0x1085   : > { %v2847_v28 = vsel %vm475_vm3, %v2842_v27, 0.0 }
0x1086   : > { %v2848_v56 = vadd.f32 %v2847_v28, %v2846_v47 }
0x1088   : > { %v2850_v16 = vadd.f32 %v2849_v15, %v2848_v56 }
0x108a   : > { %v2851_v43 = vadd.f32 %v2850_v16, %v4365_v33 }
0x108c   : > { %3718 = vmatmul.mubr.msk.f32.vlgmr.msra.gmra.mrb[42].mxu1 %vm475_vm3, %v2851_v43 }
0x108d   : > { %3838 = vmatpush3.bf16.msra.mxu1 %v3410_v36  ;;  %3735 = vmatprep.mubr.msk.f32.mxu1 %vm4057_vm5, %v4058_v49 }
0x108e   : > { %3738 = vmatprep.subr.mxu1 %v4058_v49 }
0x1090   : > { %3736 = vmatmul.mubr.msk.f32.vlgmr.msra.gmra.mrb[44].mxu1 %vm475_vm3, %v2851_v43 }
0x1091   : > { %3740 = vmatprep.mubr.msk.f32.mxu1 %vm4057_vm5, %v4058_v49 }
0x1096   : > { %3739 = vmatpush3.xpose.msk.msra.mxu1 %vm475_vm3, %v2851_v43 }
0x115f   : > { %v2921_v53 = vpop.f32.mrb[42].mxu1 }
0x1160   : > { %v3719_v9 = vpop.f32.mrb[43].mxu1  ;;  %3729 = vmatmul.mubr.msk.f32.vlgmr.msra.gmra.mrb[22].mxu0 %vm336_vm1, %v2921_v53 }
0x1163   : > { %v3069_v33 = vpop.f32.mrb[44].mxu1 }
0x1164   : > { %v3737_v51 = vpop.f32.mrb[45].mxu1  ;;  %3741 = vmatmul.mubr.msk.f32.vlgmr.msra.gmra.mrb[46].mxu1 %vm475_vm3, %v3069_v33 }
0x1233   : > { %v2994_v55 = vpop.f32.mrb[22].mxu0 }
0x1234   : > { %v2995_v50 = vadd.f32 %v2994_v55, %v4661_v62  ;;  %v3730_v18 = vpop.f32.mrb[23].mxu0 }
0x1236   : > { %3147 = vst.msk [vmem:[%s4659_s8 + $0x18] sm:$0xff] %vm336_vm1, %v2995_v50 }
0x1237   : > { %v3142_v49 = vpop.f32.mrb[46].mxu1 }
0x1238   : > { %v3146_v40 = vmax.f32 %v3142_v49, 0.0  ;;  %v3742_v8 = vpop.f32.mrb[47].mxu1 }
0x123a   : > { %3148 = vst.msk [vmem:[%s4399_s15 + $0x18] sm:$0xff] %vm1110_vm6, %v3146_v40 }
0x123b   : > { %3999 = shalt.err (!%p3996_p4)
}
0x123c   : > { %s4000_s19 = scalar_lea.hbm %s4728_s16, 512  ;;  %s4004_s29 = scalar_lea.hbm %s4782_s7, 1024 }
0x123d   : > { %p4001_p7 = scmp.ne.s32.totalorder %s4728_s16, %s4000_s19  ;;  %p4005_p10 = scmp.lt.u32.totalorder %s4728_s16, %s4782_s7 }
0x123e   : > { %p4006_p11 = scmp.lt.u32.totalorder %s4004_s29, %s4000_s19  ;;  %p4008_p13 = scmp.lt.u32.totalorder %s4000_s19, %s4728_s16 }
0x123f   : > { %p4002_p8 = pnand %p4001_p7, %p4141_p5 }
0x1240   : > { %p4007_p12 = por %p4006_p11, %p4005_p10 }
0x1241   : > { %p4003_p9 = pneg %p4002_p8 }
0x1242   : > { %p4009_p0 = por %p4008_p13, %p4007_p12 }
0x1244   : > { %p4010_p1 = pnand %p4009_p0, %p4003_p9 }
0x1246   : > { %4013 = shalt.err (!%p4010_p1)
}
0x1247   : > { %s4061_s14 = smov 128   ;;  %s4062_s23 = smov 8  }
0x1248   : > { %3841 = dma.vmem_to_hbm [thread:$0]  (%p4141_p5), %s4723_s13, 512, %s4728_s16, %s4734_s17, %s4061_s14, %s4061_s14, %s4062_s23  }
0x1249 PF: > { %p3847_p2 = scmp.ge.s32.totalorder %s4048_s27, 2  ;;  %s3194_s28 = sand.u32 1, %s4036_s24  }
0x124a   : > { %s3195_s18 = scalar_lea.sflag [#allocation3], %s3194_s28 }
0x124b   : > { %p3844_p3 = pnand %p3847_p2, %p4145_p6 }
0x124d   : > { %4031 = dma.done.wait (!%p3844_p3), %s3195_s18, 512  }
0x124e   : > { %4033 = vsyncadd (!%p3844_p3), %s3195_s18, 4294966784  ;;  %p18_p4 = scmp.ge.s32.totalorder %s4128_s30, 4   ;;  %s4787_s24 = smov %s4040_s25 }
0x124f   : > { %s4788_s25 = smov %s4044_s26  ;;  %s4789_s26 = smov %s4139_s10 }
0x1250   : > { %s4790_s27 = smov %s4128_s30  ;;  %20 = sbr.rel (!%p18_p4) target bundleno = 3 (0x3), region = 100 }
0x1257   :  { %3200 = vsyncpa [#allocation3], 1 }
0x1258   :  { %3202 = vsyncpa [#allocation3 + $0x1], 1 }

</bundles_post_ra>
